<compile_context>
chip_gen: v7x
topology: tpu7x:2x2x1
jax: 0.10.0
libtpu: 0.0.40
codegen_flags: <defaults>
</compile_context>

<pallas_src>
import functools
import math

import jax
import jax.numpy as jnp
from jax.experimental import pallas as pl
from jax.experimental.pallas import tpu as pltpu

EPS = 1e-5            # nn.LayerNorm default eps
LEAKY_SLOPE = 0.01    # nn.LeakyReLU default negative_slope
LANES = 128
_HI = jax.lax.Precision.HIGHEST


def _round_up(n, m):
    return ((n + m - 1) // m) * m


def _precise_rsqrt(x):
    # One Newton step on top of the hardware rsqrt -> ~f32-exact result
    # independent of the EUP approximation quality.
    r = jax.lax.rsqrt(x)
    return r * (1.5 - 0.5 * x * r * r)


# --------------------------------------------------------------------------
# The fused forward kernel
# --------------------------------------------------------------------------

def _fused_kernel(xs_ref, act_ref, p_ref, o_ref, *, meta, use_res, B, Z, H):
    f32 = jnp.float32

    def mat(off, r, c):                       # static tile-aligned slab view
        return p_ref[off:off + r, :c]

    def vec(off, c):                          # static (1, c) row view
        return p_ref[off:off + 1, :c]

    def layer_norm(x, g_off, b_off, d):
        mean = jnp.mean(x, axis=-1, keepdims=True)
        var = jnp.mean(jnp.square(x - mean), axis=-1, keepdims=True)
        return (x - mean) * _precise_rsqrt(var + EPS) * vec(g_off, d) + vec(b_off, d)

    # Rows [0, B) = forward-rep token, rows [B, 2B) = backward-rep token
    # (stacked in the wrapper; no in-kernel concat).
    xs = xs_ref[...]                                               # (2B, Z)

    for op in meta['attn_prog']:
        if op[0] == 'attn':
            _, qo, ko, vo, bq, bk, bv = op
            # 1/sqrt(Z) scale is pre-folded into Wq / bq at pack time.
            q = jnp.dot(xs, mat(qo, Z, Z), preferred_element_type=f32) + vec(bq, Z)
            k = jnp.dot(xs, mat(ko, Z, Z), preferred_element_type=f32) + vec(bk, Z)
            v = jnp.dot(xs, mat(vo, Z, Z), preferred_element_type=f32) + vec(bv, Z)
            # roll by B (= half the rows) swaps the two token halves: each row
            # sees the OTHER token's K / V.  XLU slot, no split/concat needed.
            k_other = pltpu.roll(k, shift=B, axis=0)
            v_other = pltpu.roll(v, shift=B, axis=0)
            s_same = jnp.sum(q * k, axis=-1, keepdims=True)        # (2B, 1)
            s_cross = jnp.sum(q * k_other, axis=-1, keepdims=True)
            m = jnp.maximum(s_same, s_cross)
            e_same = jnp.exp(s_same - m)
            e_cross = jnp.exp(s_cross - m)
            attn_out = (e_same * v + e_cross * v_other) / (e_same + e_cross)
            xs = xs + attn_out if use_res else attn_out            # residual
        elif op[0] == 'ln':
            _, g_off, b_off, d = op
            xs = layer_norm(xs, g_off, b_off, d)
        else:  # 'linear'
            _, w_off, b_off, din, dout = op
            xs = jnp.dot(xs, mat(w_off, din, dout),
                         preferred_element_type=f32) + vec(b_off, dout)
        # 'dropout': identity (eval mode), not packed.

    # linear_layers[0] on the concatenated tokens via the weight-split trick:
    #   [c0, c1] @ W == c0 @ W[:Z] + c1 @ W[Z:]   (no in-kernel lane concat)
    c0, c1 = xs[:B], xs[B:]
    lo, hi, b1, g1, be1 = meta['lin_first']
    x = (jnp.dot(c0, mat(lo, Z, H), preferred_element_type=f32)
         + jnp.dot(c1, mat(hi, Z, H), preferred_element_type=f32)
         + vec(b1, H))
    x = layer_norm(x, g1, be1, H)
    for w_off, b_off, g_off, be_off in meta['lin_rest']:
        x = jnp.dot(x, mat(w_off, H, H), preferred_element_type=f32) + vec(b_off, H)
        x = layer_norm(x, g_off, be_off, H)

    # Dueling head.  Head weights keep their zero lane-padding to 128 columns,
    # so adv / the output are lane-dense (B, 128); padded lanes stay exactly 0
    # through LeakyReLU and contribute nothing to the global mean.
    sw, sb, awx, awa, ab = meta['head']
    v_full = (jnp.dot(x, p_ref[sw:sw + H, :], preferred_element_type=f32)
              + p_ref[sb:sb + 1, :])
    v_val = v_full[:, :1]                                          # (B, 1)
    a_rows = act_ref.shape[1]
    adv = (jnp.dot(x, p_ref[awx:awx + H, :], preferred_element_type=f32)
           + jnp.dot(act_ref[...], p_ref[awa:awa + a_rows, :],
                     preferred_element_type=f32)
           + p_ref[ab:ab + 1, :])
    adv = jnp.where(adv > 0, adv, LEAKY_SLOPE * adv)               # LeakyReLU
    adv_mean = jnp.sum(adv, keepdims=True) * (1.0 / (B * H))       # global mean
    o_ref[...] = v_val + adv - adv_mean                            # (B, 128)


# --------------------------------------------------------------------------
# Parameter construction (mirrors the torch __init__ structure)
# --------------------------------------------------------------------------

def _ortho(key, din, dout, gain=1.0):
    # torch Linear weight has shape (dout, din), orthogonally initialised;
    # we store the transposed (din, dout) matrix for x @ W.
    w = jax.nn.initializers.orthogonal(scale=gain)(key, (dout, din), jnp.float32)
    return jnp.asarray(w).T


def init_params(key, action_len, z_dim, hidden_dim,
                n_attention_layers, n_linear_layers, use_fed):
    keys = iter(jax.random.split(key, 256))

    def lin(din, dout):
        return (_ortho(next(keys), din, dout), jnp.zeros((1, dout), jnp.float32))

    def lnp(d):
        return (jnp.ones((1, d), jnp.float32), jnp.zeros((1, d), jnp.float32))

    attn_layers = []
    for _ in range(n_attention_layers):
        wq, bq = lin(z_dim, z_dim)
        wk, bk = lin(z_dim, z_dim)
        wv, bv = lin(z_dim, z_dim)
        attn_layers.append(('attn', (wq, bq, wk, bk, wv, bv)))
        attn_layers.append(('ln', lnp(z_dim)))
        attn_layers.append(('dropout', ()))
        if use_fed:
            attn_layers.append(('linear', lin(z_dim, z_dim * 4)))
            attn_layers.append(('ln', lnp(z_dim * 4)))
            attn_layers.append(('linear', lin(z_dim * 4, z_dim)))
            attn_layers.append(('ln', lnp(z_dim)))

    # linear_layers[0]: Linear(2Z, H); split its weight so the kernel avoids a
    # lane-axis concatenation of the two tokens.
    w1, b1 = lin(z_dim * 2, hidden_dim)
    lin_first = (w1[:z_dim], w1[z_dim:], b1)
    lin_first_ln = lnp(hidden_dim)
    lin_rest = []
    for _ in range(n_linear_layers - 1):
        w, b = lin(hidden_dim, hidden_dim)
        g, be = lnp(hidden_dim)
        lin_rest.append((w, b, g, be))

    # state_branch[0] exists in torch but never affects the output (loop quirk);
    # allocate a dummy to keep key consumption deterministic.
    _ = lin(hidden_dim, hidden_dim)
    state_w, state_b = lin(hidden_dim, 1)

    # adv_branch[0]: Linear(hidden_dim + action_len, hidden_dim); split so the
    # kernel avoids an in-kernel lane concatenation.
    adv_w, adv_b = lin(hidden_dim + action_len, hidden_dim)
    head = (state_w, state_b, adv_w[:hidden_dim], adv_w[hidden_dim:], adv_b)

    return dict(attn_layers=attn_layers, lin_first=lin_first,
                lin_first_ln=lin_first_ln, lin_rest=lin_rest, head=head,
                z_dim=z_dim, hidden_dim=hidden_dim)


# --------------------------------------------------------------------------
# Pack EVERY parameter into one (rows, 128) slab -> a single input DMA.
# Each tensor is padded to a multiple of 8 rows and to 128 lanes, so all
# in-kernel slab views are tile-aligned static slices.
# --------------------------------------------------------------------------

def pack_params(params):
    z = params['z_dim']
    h = params['hidden_dim']
    assert 4 * z <= LANES and h <= LANES, "packing scheme assumes dims <= 128"
    scale = 1.0 / math.sqrt(z)

    blocks = []
    cursor = [0]

    def add(a):
        a = jnp.asarray(a, jnp.float32)
        if a.ndim == 1:
            a = a.reshape(1, -1)
        r, c = a.shape
        r8 = _round_up(r, 8)
        blk = jnp.zeros((r8, LANES), jnp.float32).at[:r, :c].set(a)
        blocks.append(blk)
        off = cursor[0]
        cursor[0] += r8
        return off

    prog = []
    for kind, p in params['attn_layers']:
        if kind == 'attn':
            wq, bq, wk, bk, wv, bv = p
            # Fold the 1/sqrt(Z) attention scale into the Q projection.
            prog.append(('attn', add(wq * scale), add(wk), add(wv),
                         add(bq * scale), add(bk), add(bv)))
        elif kind == 'ln':
            g, b = p
            prog.append(('ln', add(g), add(b), int(g.shape[-1])))
        elif kind == 'linear':
            w, b = p
            prog.append(('linear', add(w), add(b),
                         int(w.shape[0]), int(w.shape[1])))
        # 'dropout': identity in eval mode -> nothing to pack.

    w_lo, w_hi, b1 = params['lin_first']
    g1, be1 = params['lin_first_ln']
    lin_first = (add(w_lo), add(w_hi), add(b1), add(g1), add(be1))
    lin_rest = tuple((add(w), add(b), add(g), add(be))
                     for (w, b, g, be) in params['lin_rest'])
    sw, sb, awx, awa, ab = params['head']
    head = (add(sw), add(sb), add(awx), add(awa), add(ab))

    slab = jnp.concatenate(blocks, axis=0)
    meta = dict(attn_prog=tuple(prog), lin_first=lin_first,
                lin_rest=lin_rest, head=head)
    return slab, meta


# --------------------------------------------------------------------------
# Forward pass: one fused pallas_call
# --------------------------------------------------------------------------

def _estimate_cost(meta, b, z, h, a_pad, slab_size):
    flops = 0
    transcendentals = 0
    for op in meta['attn_prog']:
        if op[0] == 'attn':
            flops += 3 * 2 * (2 * b) * z * z + 8 * (2 * b) * z
            transcendentals += 2 * (2 * b)
        elif op[0] == 'linear':
            flops += 2 * (2 * b) * op[3] * op[4]
    flops += 2 * 2 * b * z * h
    flops += len(meta['lin_rest']) * 2 * b * h * h
    flops += 2 * b * h * LANES * 2 + 2 * b * a_pad * LANES
    bytes_accessed = 4 * (slab_size + 2 * b * z + b * a_pad + b * LANES)
    return pl.CostEstimate(flops=int(flops),
                           transcendentals=int(transcendentals),
                           bytes_accessed=int(bytes_accessed))


def forward_packed(slab, s_forward_rep, action, backward_rep, *,
                   meta, z_dim, hidden_dim, use_res=True):
    b = s_forward_rep.shape[0]
    a_len = action.shape[1]
    a_pad = _round_up(a_len, 8)
    action_p = jnp.zeros((b, a_pad), jnp.float32).at[:, :a_len].set(action)
    # Stack the two "sequence" tokens in the wrapper (fused into the producer).
    xs = jnp.concatenate([s_forward_rep, backward_rep], axis=0)        # (2B, Z)

    kern = functools.partial(_fused_kernel, meta=meta, use_res=use_res,
                             B=b, Z=z_dim, H=hidden_dim)
    out_pad = pl.pallas_call(
        kern,
        out_shape=jax.ShapeDtypeStruct((b, LANES), jnp.float32),
        in_specs=[pl.BlockSpec(memory_space=pltpu.MemorySpace.VMEM)] * 3,
        out_specs=pl.BlockSpec(memory_space=pltpu.MemorySpace.VMEM),
        cost_estimate=_estimate_cost(meta, b, z_dim, hidden_dim, a_pad, slab.size),
    )(xs, action_p, slab)
    return out_pad[:, :hidden_dim]


# --------------------------------------------------------------------------
# Pure-JAX reference (mirrors the torch forward exactly, full f32 precision)
# --------------------------------------------------------------------------

def reference_forward(params, s_forward_rep, action, backward_rep, use_res=True):
    z = params['z_dim']
    mm = lambda a, b: jnp.matmul(a, b, precision=_HI)

    def ln_ref(x, g, be):
        mean = x.mean(-1, keepdims=True)
        var = ((x - mean) ** 2).mean(-1, keepdims=True)
        return (x - mean) / jnp.sqrt(var + EPS) * g + be

    combined = jnp.stack([s_forward_rep, backward_rep], axis=1)   # (B, 2, Z)
    for kind, p in params['attn_layers']:
        if kind == 'attn':
            wq, bq, wk, bk, wv, bv = p
            Q = mm(combined, wq) + bq
            K = mm(combined, wk) + bk
            V = mm(combined, wv) + bv
            scores = jnp.einsum('bid,bjd->bij', Q, K, precision=_HI) / (float(z) ** 0.5)
            w = jax.nn.softmax(scores, axis=-1)
            out = jnp.einsum('bij,bjd->bid', w, V, precision=_HI)
            combined = combined + out if use_res else out
        elif kind == 'ln':
            g, be = p
            combined = ln_ref(combined, g, be)
        elif kind == 'linear':
            w, be = p
            combined = mm(combined, w) + be

    x = jnp.concatenate([combined[:, 0, :], combined[:, 1, :]], axis=-1)
    w_lo, w_hi, b1 = params['lin_first']
    x = mm(x, jnp.concatenate([w_lo, w_hi], axis=0)) + b1
    g, be = params['lin_first_ln']
    x = ln_ref(x, g, be)
    for w, b, g, be in params['lin_rest']:
        x = mm(x, w) + b
        x = ln_ref(x, g, be)

    state_w, state_b, adv_wx, adv_wa, adv_b = params['head']
    v = mm(x, state_w) + state_b
    adv = mm(x, adv_wx) + mm(action, adv_wa) + adv_b
    adv = jnp.where(adv > 0, adv, LEAKY_SLOPE * adv)
    return v + adv - adv.mean()


# --------------------------------------------------------------------------

if __name__ == "__main__":
    B, ACTION_LEN, Z_DIM, HIDDEN = 8, 4, 32, 32
    N_ATTN_LAYERS, N_LINEAR_LAYERS = 2, 2
    USE_RES, USE_FED = True, True

    key = jax.random.PRNGKey(0)
    pkey, k1, k2, k3 = jax.random.split(key, 4)

    params = init_params(pkey, ACTION_LEN, Z_DIM, HIDDEN,
                         N_ATTN_LAYERS, N_LINEAR_LAYERS, USE_FED)
    slab, meta = pack_params(params)

    s_forward_rep = jax.random.normal(k1, (B, Z_DIM), jnp.float32)
    action = jax.random.normal(k2, (B, ACTION_LEN), jnp.float32)
    backward_rep = jax.random.normal(k3, (B, Z_DIM), jnp.float32)

    fwd = jax.jit(functools.partial(forward_packed, meta=meta, z_dim=Z_DIM,
                                    hidden_dim=HIDDEN, use_res=USE_RES))
    out = jax.block_until_ready(fwd(slab, s_forward_rep, action, backward_rep))

    ref = reference_forward(params, s_forward_rep, action, backward_rep,
                            use_res=USE_RES)

    assert out.shape == (B, HIDDEN), out.shape
    max_err = float(jnp.max(jnp.abs(out - ref)))
    assert jnp.allclose(out, ref, atol=2e-3, rtol=2e-3), max_err
    print("KERNEL_OK")
</pallas_src>

<mosaic_0001>
module attributes {stable_mosaic.version = 11 : i64} {
  func.func @_fused_kernel(%arg0: memref<16x32xf32, #tpu.memory_space<vmem>>, %arg1: memref<8x8xf32, #tpu.memory_space<vmem>>, %arg2: memref<920x128xf32, #tpu.memory_space<vmem>>, %arg3: memref<8x128xf32, #tpu.memory_space<vmem>>) attributes {dimension_semantics = [], scalar_prefetch = 0 : i64, scratch_operands = 0 : i64, tpu.core_type = #tpu.core_type<tc>} {
    %c0 = arith.constant 0 : index
    %c0_0 = arith.constant 0 : index
    %0 = vector.load %arg0[%c0, %c0_0] : memref<16x32xf32, #tpu.memory_space<vmem>>, vector<16x32xf32>
    %c0_1 = arith.constant 0 : index
    %c0_2 = arith.constant 0 : index
    %1 = vector.load %arg2[%c0_1, %c0_2] : memref<920x128xf32, #tpu.memory_space<vmem>>, vector<32x32xf32>
    %cst = arith.constant dense<0.000000e+00> : vector<16x32xf32>
    %2 = tpu.matmul %0, %1, %cst {dimension_numbers = #tpu.dot_dimension_numbers<[1], [0], [0], [1], [0, 0, 1, 1], [], []>} : vector<16x32xf32>, vector<32x32xf32>, vector<16x32xf32> -> vector<16x32xf32>
    %c96 = arith.constant 96 : index
    %c0_3 = arith.constant 0 : index
    %3 = vector.load %arg2[%c96, %c0_3] : memref<920x128xf32, #tpu.memory_space<vmem>>, vector<1x32xf32>
    %4 = vector.broadcast %3 : vector<1x32xf32> to vector<16x32xf32>
    %5 = arith.addf %2, %4 : vector<16x32xf32>
    %c32 = arith.constant 32 : index
    %c0_4 = arith.constant 0 : index
    %6 = vector.load %arg2[%c32, %c0_4] : memref<920x128xf32, #tpu.memory_space<vmem>>, vector<32x32xf32>
    %cst_5 = arith.constant dense<0.000000e+00> : vector<16x32xf32>
    %7 = tpu.matmul %0, %6, %cst_5 {dimension_numbers = #tpu.dot_dimension_numbers<[1], [0], [0], [1], [0, 0, 1, 1], [], []>} : vector<16x32xf32>, vector<32x32xf32>, vector<16x32xf32> -> vector<16x32xf32>
    %c104 = arith.constant 104 : index
    %c0_6 = arith.constant 0 : index
    %8 = vector.load %arg2[%c104, %c0_6] : memref<920x128xf32, #tpu.memory_space<vmem>>, vector<1x32xf32>
    %9 = vector.broadcast %8 : vector<1x32xf32> to vector<16x32xf32>
    %10 = arith.addf %7, %9 : vector<16x32xf32>
    %c64 = arith.constant 64 : index
    %c0_7 = arith.constant 0 : index
    %11 = vector.load %arg2[%c64, %c0_7] : memref<920x128xf32, #tpu.memory_space<vmem>>, vector<32x32xf32>
    %cst_8 = arith.constant dense<0.000000e+00> : vector<16x32xf32>
    %12 = tpu.matmul %0, %11, %cst_8 {dimension_numbers = #tpu.dot_dimension_numbers<[1], [0], [0], [1], [0, 0, 1, 1], [], []>} : vector<16x32xf32>, vector<32x32xf32>, vector<16x32xf32> -> vector<16x32xf32>
    %c112 = arith.constant 112 : index
    %c0_9 = arith.constant 0 : index
    %13 = vector.load %arg2[%c112, %c0_9] : memref<920x128xf32, #tpu.memory_space<vmem>>, vector<1x32xf32>
    %14 = vector.broadcast %13 : vector<1x32xf32> to vector<16x32xf32>
    %15 = arith.addf %12, %14 : vector<16x32xf32>
    %c8_i32 = arith.constant 8 : i32
    %16 = tpu.dynamic_rotate %10 by %c8_i32 dim 0 : vector<16x32xf32>, i32 -> vector<16x32xf32>
    %c8_i32_10 = arith.constant 8 : i32
    %17 = tpu.dynamic_rotate %15 by %c8_i32_10 dim 0 : vector<16x32xf32>, i32 -> vector<16x32xf32>
    %18 = arith.mulf %5, %10 : vector<16x32xf32>
    %cst_11 = arith.constant dense<0.000000e+00> : vector<16xf32>
    %19 = vector.multi_reduction <add>, %18, %cst_11 [1] : vector<16x32xf32> to vector<16xf32>
    %20 = vector.shape_cast %19 : vector<16xf32> to vector<16x1xf32>
    %21 = arith.mulf %5, %16 : vector<16x32xf32>
    %cst_12 = arith.constant dense<0.000000e+00> : vector<16xf32>
    %22 = vector.multi_reduction <add>, %21, %cst_12 [1] : vector<16x32xf32> to vector<16xf32>
    %23 = vector.shape_cast %22 : vector<16xf32> to vector<16x1xf32>
    %24 = arith.maximumf %20, %23 : vector<16x1xf32>
    %25 = arith.subf %20, %24 : vector<16x1xf32>
    %26 = math.exp %25 : vector<16x1xf32>
    %27 = arith.subf %23, %24 : vector<16x1xf32>
    %28 = math.exp %27 : vector<16x1xf32>
    %29 = vector.broadcast %26 : vector<16x1xf32> to vector<16x32xf32>
    %30 = arith.mulf %29, %15 : vector<16x32xf32>
    %31 = vector.broadcast %28 : vector<16x1xf32> to vector<16x32xf32>
    %32 = arith.mulf %31, %17 : vector<16x32xf32>
    %33 = arith.addf %30, %32 : vector<16x32xf32>
    %34 = arith.addf %26, %28 : vector<16x1xf32>
    %35 = vector.broadcast %34 : vector<16x1xf32> to vector<16x32xf32>
    %36 = arith.divf %33, %35 : vector<16x32xf32>
    %37 = arith.addf %0, %36 : vector<16x32xf32>
    %cst_13 = arith.constant dense<0.000000e+00> : vector<16xf32>
    %38 = vector.multi_reduction <add>, %37, %cst_13 [1] : vector<16x32xf32> to vector<16xf32>
    %39 = vector.shape_cast %38 : vector<16xf32> to vector<16x1xf32>
    %cst_14 = arith.constant 3.200000e+01 : f32
    %40 = vector.broadcast %cst_14 : f32 to vector<16x1xf32>
    %41 = arith.divf %39, %40 : vector<16x1xf32>
    %42 = vector.broadcast %41 : vector<16x1xf32> to vector<16x32xf32>
    %43 = arith.subf %37, %42 : vector<16x32xf32>
    %44 = arith.mulf %43, %43 : vector<16x32xf32>
    %cst_15 = arith.constant dense<0.000000e+00> : vector<16xf32>
    %45 = vector.multi_reduction <add>, %44, %cst_15 [1] : vector<16x32xf32> to vector<16xf32>
    %46 = vector.shape_cast %45 : vector<16xf32> to vector<16x1xf32>
    %cst_16 = arith.constant 3.200000e+01 : f32
    %47 = vector.broadcast %cst_16 : f32 to vector<16x1xf32>
    %48 = arith.divf %46, %47 : vector<16x1xf32>
    %49 = vector.broadcast %41 : vector<16x1xf32> to vector<16x32xf32>
    %50 = arith.subf %37, %49 : vector<16x32xf32>
    %cst_17 = arith.constant 9.99999974E-6 : f32
    %51 = vector.broadcast %cst_17 : f32 to vector<16x1xf32>
    %52 = arith.addf %48, %51 : vector<16x1xf32>
    %53 = math.rsqrt %52 : vector<16x1xf32>
    %cst_18 = arith.constant 5.000000e-01 : f32
    %54 = vector.broadcast %cst_18 : f32 to vector<16x1xf32>
    %55 = arith.mulf %54, %52 : vector<16x1xf32>
    %56 = arith.mulf %55, %53 : vector<16x1xf32>
    %57 = arith.mulf %56, %53 : vector<16x1xf32>
    %cst_19 = arith.constant 1.500000e+00 : f32
    %58 = vector.broadcast %cst_19 : f32 to vector<16x1xf32>
    %59 = arith.subf %58, %57 : vector<16x1xf32>
    %60 = arith.mulf %53, %59 : vector<16x1xf32>
    %61 = vector.broadcast %60 : vector<16x1xf32> to vector<16x32xf32>
    %62 = arith.mulf %50, %61 : vector<16x32xf32>
    %c120 = arith.constant 120 : index
    %c0_20 = arith.constant 0 : index
    %63 = vector.load %arg2[%c120, %c0_20] : memref<920x128xf32, #tpu.memory_space<vmem>>, vector<1x32xf32>
    %64 = vector.broadcast %63 : vector<1x32xf32> to vector<16x32xf32>
    %65 = arith.mulf %62, %64 : vector<16x32xf32>
    %c128 = arith.constant 128 : index
    %c0_21 = arith.constant 0 : index
    %66 = vector.load %arg2[%c128, %c0_21] : memref<920x128xf32, #tpu.memory_space<vmem>>, vector<1x32xf32>
    %67 = vector.broadcast %66 : vector<1x32xf32> to vector<16x32xf32>
    %68 = arith.addf %65, %67 : vector<16x32xf32>
    %c136 = arith.constant 136 : index
    %c0_22 = arith.constant 0 : index
    %69 = vector.load %arg2[%c136, %c0_22] : memref<920x128xf32, #tpu.memory_space<vmem>>, vector<32x128xf32>
    %cst_23 = arith.constant dense<0.000000e+00> : vector<16x128xf32>
    %70 = tpu.matmul %68, %69, %cst_23 {dimension_numbers = #tpu.dot_dimension_numbers<[1], [0], [0], [1], [0, 0, 1, 1], [], []>} : vector<16x32xf32>, vector<32x128xf32>, vector<16x128xf32> -> vector<16x128xf32>
    %c168 = arith.constant 168 : index
    %c0_24 = arith.constant 0 : index
    %71 = vector.load %arg2[%c168, %c0_24] : memref<920x128xf32, #tpu.memory_space<vmem>>, vector<1x128xf32>
    %72 = vector.broadcast %71 : vector<1x128xf32> to vector<16x128xf32>
    %73 = arith.addf %70, %72 : vector<16x128xf32>
    %cst_25 = arith.constant dense<0.000000e+00> : vector<16xf32>
    %74 = vector.multi_reduction <add>, %73, %cst_25 [1] : vector<16x128xf32> to vector<16xf32>
    %75 = vector.shape_cast %74 : vector<16xf32> to vector<16x1xf32>
    %cst_26 = arith.constant 1.280000e+02 : f32
    %76 = vector.broadcast %cst_26 : f32 to vector<16x1xf32>
    %77 = arith.divf %75, %76 : vector<16x1xf32>
    %78 = vector.broadcast %77 : vector<16x1xf32> to vector<16x128xf32>
    %79 = arith.subf %73, %78 : vector<16x128xf32>
    %80 = arith.mulf %79, %79 : vector<16x128xf32>
    %cst_27 = arith.constant dense<0.000000e+00> : vector<16xf32>
    %81 = vector.multi_reduction <add>, %80, %cst_27 [1] : vector<16x128xf32> to vector<16xf32>
    %82 = vector.shape_cast %81 : vector<16xf32> to vector<16x1xf32>
    %cst_28 = arith.constant 1.280000e+02 : f32
    %83 = vector.broadcast %cst_28 : f32 to vector<16x1xf32>
    %84 = arith.divf %82, %83 : vector<16x1xf32>
    %85 = vector.broadcast %77 : vector<16x1xf32> to vector<16x128xf32>
    %86 = arith.subf %73, %85 : vector<16x128xf32>
    %cst_29 = arith.constant 9.99999974E-6 : f32
    %87 = vector.broadcast %cst_29 : f32 to vector<16x1xf32>
    %88 = arith.addf %84, %87 : vector<16x1xf32>
    %89 = math.rsqrt %88 : vector<16x1xf32>
    %cst_30 = arith.constant 5.000000e-01 : f32
    %90 = vector.broadcast %cst_30 : f32 to vector<16x1xf32>
    %91 = arith.mulf %90, %88 : vector<16x1xf32>
    %92 = arith.mulf %91, %89 : vector<16x1xf32>
    %93 = arith.mulf %92, %89 : vector<16x1xf32>
    %cst_31 = arith.constant 1.500000e+00 : f32
    %94 = vector.broadcast %cst_31 : f32 to vector<16x1xf32>
    %95 = arith.subf %94, %93 : vector<16x1xf32>
    %96 = arith.mulf %89, %95 : vector<16x1xf32>
    %97 = vector.broadcast %96 : vector<16x1xf32> to vector<16x128xf32>
    %98 = arith.mulf %86, %97 : vector<16x128xf32>
    %c176 = arith.constant 176 : index
    %c0_32 = arith.constant 0 : index
    %99 = vector.load %arg2[%c176, %c0_32] : memref<920x128xf32, #tpu.memory_space<vmem>>, vector<1x128xf32>
    %100 = vector.broadcast %99 : vector<1x128xf32> to vector<16x128xf32>
    %101 = arith.mulf %98, %100 : vector<16x128xf32>
    %c184 = arith.constant 184 : index
    %c0_33 = arith.constant 0 : index
    %102 = vector.load %arg2[%c184, %c0_33] : memref<920x128xf32, #tpu.memory_space<vmem>>, vector<1x128xf32>
    %103 = vector.broadcast %102 : vector<1x128xf32> to vector<16x128xf32>
    %104 = arith.addf %101, %103 : vector<16x128xf32>
    %c192 = arith.constant 192 : index
    %c0_34 = arith.constant 0 : index
    %105 = vector.load %arg2[%c192, %c0_34] : memref<920x128xf32, #tpu.memory_space<vmem>>, vector<128x32xf32>
    %cst_35 = arith.constant dense<0.000000e+00> : vector<16x32xf32>
    %106 = tpu.matmul %104, %105, %cst_35 {dimension_numbers = #tpu.dot_dimension_numbers<[1], [0], [0], [1], [0, 0, 1, 1], [], []>} : vector<16x128xf32>, vector<128x32xf32>, vector<16x32xf32> -> vector<16x32xf32>
    %c320 = arith.constant 320 : index
    %c0_36 = arith.constant 0 : index
    %107 = vector.load %arg2[%c320, %c0_36] : memref<920x128xf32, #tpu.memory_space<vmem>>, vector<1x32xf32>
    %108 = vector.broadcast %107 : vector<1x32xf32> to vector<16x32xf32>
    %109 = arith.addf %106, %108 : vector<16x32xf32>
    %cst_37 = arith.constant dense<0.000000e+00> : vector<16xf32>
    %110 = vector.multi_reduction <add>, %109, %cst_37 [1] : vector<16x32xf32> to vector<16xf32>
    %111 = vector.shape_cast %110 : vector<16xf32> to vector<16x1xf32>
    %cst_38 = arith.constant 3.200000e+01 : f32
    %112 = vector.broadcast %cst_38 : f32 to vector<16x1xf32>
    %113 = arith.divf %111, %112 : vector<16x1xf32>
    %114 = vector.broadcast %113 : vector<16x1xf32> to vector<16x32xf32>
    %115 = arith.subf %109, %114 : vector<16x32xf32>
    %116 = arith.mulf %115, %115 : vector<16x32xf32>
    %cst_39 = arith.constant dense<0.000000e+00> : vector<16xf32>
    %117 = vector.multi_reduction <add>, %116, %cst_39 [1] : vector<16x32xf32> to vector<16xf32>
    %118 = vector.shape_cast %117 : vector<16xf32> to vector<16x1xf32>
    %cst_40 = arith.constant 3.200000e+01 : f32
    %119 = vector.broadcast %cst_40 : f32 to vector<16x1xf32>
    %120 = arith.divf %118, %119 : vector<16x1xf32>
    %121 = vector.broadcast %113 : vector<16x1xf32> to vector<16x32xf32>
    %122 = arith.subf %109, %121 : vector<16x32xf32>
    %cst_41 = arith.constant 9.99999974E-6 : f32
    %123 = vector.broadcast %cst_41 : f32 to vector<16x1xf32>
    %124 = arith.addf %120, %123 : vector<16x1xf32>
    %125 = math.rsqrt %124 : vector<16x1xf32>
    %cst_42 = arith.constant 5.000000e-01 : f32
    %126 = vector.broadcast %cst_42 : f32 to vector<16x1xf32>
    %127 = arith.mulf %126, %124 : vector<16x1xf32>
    %128 = arith.mulf %127, %125 : vector<16x1xf32>
    %129 = arith.mulf %128, %125 : vector<16x1xf32>
    %cst_43 = arith.constant 1.500000e+00 : f32
    %130 = vector.broadcast %cst_43 : f32 to vector<16x1xf32>
    %131 = arith.subf %130, %129 : vector<16x1xf32>
    %132 = arith.mulf %125, %131 : vector<16x1xf32>
    %133 = vector.broadcast %132 : vector<16x1xf32> to vector<16x32xf32>
    %134 = arith.mulf %122, %133 : vector<16x32xf32>
    %c328 = arith.constant 328 : index
    %c0_44 = arith.constant 0 : index
    %135 = vector.load %arg2[%c328, %c0_44] : memref<920x128xf32, #tpu.memory_space<vmem>>, vector<1x32xf32>
    %136 = vector.broadcast %135 : vector<1x32xf32> to vector<16x32xf32>
    %137 = arith.mulf %134, %136 : vector<16x32xf32>
    %c336 = arith.constant 336 : index
    %c0_45 = arith.constant 0 : index
    %138 = vector.load %arg2[%c336, %c0_45] : memref<920x128xf32, #tpu.memory_space<vmem>>, vector<1x32xf32>
    %139 = vector.broadcast %138 : vector<1x32xf32> to vector<16x32xf32>
    %140 = arith.addf %137, %139 : vector<16x32xf32>
    %c344 = arith.constant 344 : index
    %c0_46 = arith.constant 0 : index
    %141 = vector.load %arg2[%c344, %c0_46] : memref<920x128xf32, #tpu.memory_space<vmem>>, vector<32x32xf32>
    %cst_47 = arith.constant dense<0.000000e+00> : vector<16x32xf32>
    %142 = tpu.matmul %140, %141, %cst_47 {dimension_numbers = #tpu.dot_dimension_numbers<[1], [0], [0], [1], [0, 0, 1, 1], [], []>} : vector<16x32xf32>, vector<32x32xf32>, vector<16x32xf32> -> vector<16x32xf32>
    %c440 = arith.constant 440 : index
    %c0_48 = arith.constant 0 : index
    %143 = vector.load %arg2[%c440, %c0_48] : memref<920x128xf32, #tpu.memory_space<vmem>>, vector<1x32xf32>
    %144 = vector.broadcast %143 : vector<1x32xf32> to vector<16x32xf32>
    %145 = arith.addf %142, %144 : vector<16x32xf32>
    %c376 = arith.constant 376 : index
    %c0_49 = arith.constant 0 : index
    %146 = vector.load %arg2[%c376, %c0_49] : memref<920x128xf32, #tpu.memory_space<vmem>>, vector<32x32xf32>
    %cst_50 = arith.constant dense<0.000000e+00> : vector<16x32xf32>
    %147 = tpu.matmul %140, %146, %cst_50 {dimension_numbers = #tpu.dot_dimension_numbers<[1], [0], [0], [1], [0, 0, 1, 1], [], []>} : vector<16x32xf32>, vector<32x32xf32>, vector<16x32xf32> -> vector<16x32xf32>
    %c448 = arith.constant 448 : index
    %c0_51 = arith.constant 0 : index
    %148 = vector.load %arg2[%c448, %c0_51] : memref<920x128xf32, #tpu.memory_space<vmem>>, vector<1x32xf32>
    %149 = vector.broadcast %148 : vector<1x32xf32> to vector<16x32xf32>
    %150 = arith.addf %147, %149 : vector<16x32xf32>
    %c408 = arith.constant 408 : index
    %c0_52 = arith.constant 0 : index
    %151 = vector.load %arg2[%c408, %c0_52] : memref<920x128xf32, #tpu.memory_space<vmem>>, vector<32x32xf32>
    %cst_53 = arith.constant dense<0.000000e+00> : vector<16x32xf32>
    %152 = tpu.matmul %140, %151, %cst_53 {dimension_numbers = #tpu.dot_dimension_numbers<[1], [0], [0], [1], [0, 0, 1, 1], [], []>} : vector<16x32xf32>, vector<32x32xf32>, vector<16x32xf32> -> vector<16x32xf32>
    %c456 = arith.constant 456 : index
    %c0_54 = arith.constant 0 : index
    %153 = vector.load %arg2[%c456, %c0_54] : memref<920x128xf32, #tpu.memory_space<vmem>>, vector<1x32xf32>
    %154 = vector.broadcast %153 : vector<1x32xf32> to vector<16x32xf32>
    %155 = arith.addf %152, %154 : vector<16x32xf32>
    %c8_i32_55 = arith.constant 8 : i32
    %156 = tpu.dynamic_rotate %150 by %c8_i32_55 dim 0 : vector<16x32xf32>, i32 -> vector<16x32xf32>
    %c8_i32_56 = arith.constant 8 : i32
    %157 = tpu.dynamic_rotate %155 by %c8_i32_56 dim 0 : vector<16x32xf32>, i32 -> vector<16x32xf32>
    %158 = arith.mulf %145, %150 : vector<16x32xf32>
    %cst_57 = arith.constant dense<0.000000e+00> : vector<16xf32>
    %159 = vector.multi_reduction <add>, %158, %cst_57 [1] : vector<16x32xf32> to vector<16xf32>
    %160 = vector.shape_cast %159 : vector<16xf32> to vector<16x1xf32>
    %161 = arith.mulf %145, %156 : vector<16x32xf32>
    %cst_58 = arith.constant dense<0.000000e+00> : vector<16xf32>
    %162 = vector.multi_reduction <add>, %161, %cst_58 [1] : vector<16x32xf32> to vector<16xf32>
    %163 = vector.shape_cast %162 : vector<16xf32> to vector<16x1xf32>
    %164 = arith.maximumf %160, %163 : vector<16x1xf32>
    %165 = arith.subf %160, %164 : vector<16x1xf32>
    %166 = math.exp %165 : vector<16x1xf32>
    %167 = arith.subf %163, %164 : vector<16x1xf32>
    %168 = math.exp %167 : vector<16x1xf32>
    %169 = vector.broadcast %166 : vector<16x1xf32> to vector<16x32xf32>
    %170 = arith.mulf %169, %155 : vector<16x32xf32>
    %171 = vector.broadcast %168 : vector<16x1xf32> to vector<16x32xf32>
    %172 = arith.mulf %171, %157 : vector<16x32xf32>
    %173 = arith.addf %170, %172 : vector<16x32xf32>
    %174 = arith.addf %166, %168 : vector<16x1xf32>
    %175 = vector.broadcast %174 : vector<16x1xf32> to vector<16x32xf32>
    %176 = arith.divf %173, %175 : vector<16x32xf32>
    %177 = arith.addf %140, %176 : vector<16x32xf32>
    %cst_59 = arith.constant dense<0.000000e+00> : vector<16xf32>
    %178 = vector.multi_reduction <add>, %177, %cst_59 [1] : vector<16x32xf32> to vector<16xf32>
    %179 = vector.shape_cast %178 : vector<16xf32> to vector<16x1xf32>
    %cst_60 = arith.constant 3.200000e+01 : f32
    %180 = vector.broadcast %cst_60 : f32 to vector<16x1xf32>
    %181 = arith.divf %179, %180 : vector<16x1xf32>
    %182 = vector.broadcast %181 : vector<16x1xf32> to vector<16x32xf32>
    %183 = arith.subf %177, %182 : vector<16x32xf32>
    %184 = arith.mulf %183, %183 : vector<16x32xf32>
    %cst_61 = arith.constant dense<0.000000e+00> : vector<16xf32>
    %185 = vector.multi_reduction <add>, %184, %cst_61 [1] : vector<16x32xf32> to vector<16xf32>
    %186 = vector.shape_cast %185 : vector<16xf32> to vector<16x1xf32>
    %cst_62 = arith.constant 3.200000e+01 : f32
    %187 = vector.broadcast %cst_62 : f32 to vector<16x1xf32>
    %188 = arith.divf %186, %187 : vector<16x1xf32>
    %189 = vector.broadcast %181 : vector<16x1xf32> to vector<16x32xf32>
    %190 = arith.subf %177, %189 : vector<16x32xf32>
    %cst_63 = arith.constant 9.99999974E-6 : f32
    %191 = vector.broadcast %cst_63 : f32 to vector<16x1xf32>
    %192 = arith.addf %188, %191 : vector<16x1xf32>
    %193 = math.rsqrt %192 : vector<16x1xf32>
    %cst_64 = arith.constant 5.000000e-01 : f32
    %194 = vector.broadcast %cst_64 : f32 to vector<16x1xf32>
    %195 = arith.mulf %194, %192 : vector<16x1xf32>
    %196 = arith.mulf %195, %193 : vector<16x1xf32>
    %197 = arith.mulf %196, %193 : vector<16x1xf32>
    %cst_65 = arith.constant 1.500000e+00 : f32
    %198 = vector.broadcast %cst_65 : f32 to vector<16x1xf32>
    %199 = arith.subf %198, %197 : vector<16x1xf32>
    %200 = arith.mulf %193, %199 : vector<16x1xf32>
    %201 = vector.broadcast %200 : vector<16x1xf32> to vector<16x32xf32>
    %202 = arith.mulf %190, %201 : vector<16x32xf32>
    %c464 = arith.constant 464 : index
    %c0_66 = arith.constant 0 : index
    %203 = vector.load %arg2[%c464, %c0_66] : memref<920x128xf32, #tpu.memory_space<vmem>>, vector<1x32xf32>
    %204 = vector.broadcast %203 : vector<1x32xf32> to vector<16x32xf32>
    %205 = arith.mulf %202, %204 : vector<16x32xf32>
    %c472 = arith.constant 472 : index
    %c0_67 = arith.constant 0 : index
    %206 = vector.load %arg2[%c472, %c0_67] : memref<920x128xf32, #tpu.memory_space<vmem>>, vector<1x32xf32>
    %207 = vector.broadcast %206 : vector<1x32xf32> to vector<16x32xf32>
    %208 = arith.addf %205, %207 : vector<16x32xf32>
    %c480 = arith.constant 480 : index
    %c0_68 = arith.constant 0 : index
    %209 = vector.load %arg2[%c480, %c0_68] : memref<920x128xf32, #tpu.memory_space<vmem>>, vector<32x128xf32>
    %cst_69 = arith.constant dense<0.000000e+00> : vector<16x128xf32>
    %210 = tpu.matmul %208, %209, %cst_69 {dimension_numbers = #tpu.dot_dimension_numbers<[1], [0], [0], [1], [0, 0, 1, 1], [], []>} : vector<16x32xf32>, vector<32x128xf32>, vector<16x128xf32> -> vector<16x128xf32>
    %c512 = arith.constant 512 : index
    %c0_70 = arith.constant 0 : index
    %211 = vector.load %arg2[%c512, %c0_70] : memref<920x128xf32, #tpu.memory_space<vmem>>, vector<1x128xf32>
    %212 = vector.broadcast %211 : vector<1x128xf32> to vector<16x128xf32>
    %213 = arith.addf %210, %212 : vector<16x128xf32>
    %cst_71 = arith.constant dense<0.000000e+00> : vector<16xf32>
    %214 = vector.multi_reduction <add>, %213, %cst_71 [1] : vector<16x128xf32> to vector<16xf32>
    %215 = vector.shape_cast %214 : vector<16xf32> to vector<16x1xf32>
    %cst_72 = arith.constant 1.280000e+02 : f32
    %216 = vector.broadcast %cst_72 : f32 to vector<16x1xf32>
    %217 = arith.divf %215, %216 : vector<16x1xf32>
    %218 = vector.broadcast %217 : vector<16x1xf32> to vector<16x128xf32>
    %219 = arith.subf %213, %218 : vector<16x128xf32>
    %220 = arith.mulf %219, %219 : vector<16x128xf32>
    %cst_73 = arith.constant dense<0.000000e+00> : vector<16xf32>
    %221 = vector.multi_reduction <add>, %220, %cst_73 [1] : vector<16x128xf32> to vector<16xf32>
    %222 = vector.shape_cast %221 : vector<16xf32> to vector<16x1xf32>
    %cst_74 = arith.constant 1.280000e+02 : f32
    %223 = vector.broadcast %cst_74 : f32 to vector<16x1xf32>
    %224 = arith.divf %222, %223 : vector<16x1xf32>
    %225 = vector.broadcast %217 : vector<16x1xf32> to vector<16x128xf32>
    %226 = arith.subf %213, %225 : vector<16x128xf32>
    %cst_75 = arith.constant 9.99999974E-6 : f32
    %227 = vector.broadcast %cst_75 : f32 to vector<16x1xf32>
    %228 = arith.addf %224, %227 : vector<16x1xf32>
    %229 = math.rsqrt %228 : vector<16x1xf32>
    %cst_76 = arith.constant 5.000000e-01 : f32
    %230 = vector.broadcast %cst_76 : f32 to vector<16x1xf32>
    %231 = arith.mulf %230, %228 : vector<16x1xf32>
    %232 = arith.mulf %231, %229 : vector<16x1xf32>
    %233 = arith.mulf %232, %229 : vector<16x1xf32>
    %cst_77 = arith.constant 1.500000e+00 : f32
    %234 = vector.broadcast %cst_77 : f32 to vector<16x1xf32>
    %235 = arith.subf %234, %233 : vector<16x1xf32>
    %236 = arith.mulf %229, %235 : vector<16x1xf32>
    %237 = vector.broadcast %236 : vector<16x1xf32> to vector<16x128xf32>
    %238 = arith.mulf %226, %237 : vector<16x128xf32>
    %c520 = arith.constant 520 : index
    %c0_78 = arith.constant 0 : index
    %239 = vector.load %arg2[%c520, %c0_78] : memref<920x128xf32, #tpu.memory_space<vmem>>, vector<1x128xf32>
    %240 = vector.broadcast %239 : vector<1x128xf32> to vector<16x128xf32>
    %241 = arith.mulf %238, %240 : vector<16x128xf32>
    %c528 = arith.constant 528 : index
    %c0_79 = arith.constant 0 : index
    %242 = vector.load %arg2[%c528, %c0_79] : memref<920x128xf32, #tpu.memory_space<vmem>>, vector<1x128xf32>
    %243 = vector.broadcast %242 : vector<1x128xf32> to vector<16x128xf32>
    %244 = arith.addf %241, %243 : vector<16x128xf32>
    %c536 = arith.constant 536 : index
    %c0_80 = arith.constant 0 : index
    %245 = vector.load %arg2[%c536, %c0_80] : memref<920x128xf32, #tpu.memory_space<vmem>>, vector<128x32xf32>
    %cst_81 = arith.constant dense<0.000000e+00> : vector<16x32xf32>
    %246 = tpu.matmul %244, %245, %cst_81 {dimension_numbers = #tpu.dot_dimension_numbers<[1], [0], [0], [1], [0, 0, 1, 1], [], []>} : vector<16x128xf32>, vector<128x32xf32>, vector<16x32xf32> -> vector<16x32xf32>
    %c664 = arith.constant 664 : index
    %c0_82 = arith.constant 0 : index
    %247 = vector.load %arg2[%c664, %c0_82] : memref<920x128xf32, #tpu.memory_space<vmem>>, vector<1x32xf32>
    %248 = vector.broadcast %247 : vector<1x32xf32> to vector<16x32xf32>
    %249 = arith.addf %246, %248 : vector<16x32xf32>
    %cst_83 = arith.constant dense<0.000000e+00> : vector<16xf32>
    %250 = vector.multi_reduction <add>, %249, %cst_83 [1] : vector<16x32xf32> to vector<16xf32>
    %251 = vector.shape_cast %250 : vector<16xf32> to vector<16x1xf32>
    %cst_84 = arith.constant 3.200000e+01 : f32
    %252 = vector.broadcast %cst_84 : f32 to vector<16x1xf32>
    %253 = arith.divf %251, %252 : vector<16x1xf32>
    %254 = vector.broadcast %253 : vector<16x1xf32> to vector<16x32xf32>
    %255 = arith.subf %249, %254 : vector<16x32xf32>
    %256 = arith.mulf %255, %255 : vector<16x32xf32>
    %cst_85 = arith.constant dense<0.000000e+00> : vector<16xf32>
    %257 = vector.multi_reduction <add>, %256, %cst_85 [1] : vector<16x32xf32> to vector<16xf32>
    %258 = vector.shape_cast %257 : vector<16xf32> to vector<16x1xf32>
    %cst_86 = arith.constant 3.200000e+01 : f32
    %259 = vector.broadcast %cst_86 : f32 to vector<16x1xf32>
    %260 = arith.divf %258, %259 : vector<16x1xf32>
    %261 = vector.broadcast %253 : vector<16x1xf32> to vector<16x32xf32>
    %262 = arith.subf %249, %261 : vector<16x32xf32>
    %cst_87 = arith.constant 9.99999974E-6 : f32
    %263 = vector.broadcast %cst_87 : f32 to vector<16x1xf32>
    %264 = arith.addf %260, %263 : vector<16x1xf32>
    %265 = math.rsqrt %264 : vector<16x1xf32>
    %cst_88 = arith.constant 5.000000e-01 : f32
    %266 = vector.broadcast %cst_88 : f32 to vector<16x1xf32>
    %267 = arith.mulf %266, %264 : vector<16x1xf32>
    %268 = arith.mulf %267, %265 : vector<16x1xf32>
    %269 = arith.mulf %268, %265 : vector<16x1xf32>
    %cst_89 = arith.constant 1.500000e+00 : f32
    %270 = vector.broadcast %cst_89 : f32 to vector<16x1xf32>
    %271 = arith.subf %270, %269 : vector<16x1xf32>
    %272 = arith.mulf %265, %271 : vector<16x1xf32>
    %273 = vector.broadcast %272 : vector<16x1xf32> to vector<16x32xf32>
    %274 = arith.mulf %262, %273 : vector<16x32xf32>
    %c672 = arith.constant 672 : index
    %c0_90 = arith.constant 0 : index
    %275 = vector.load %arg2[%c672, %c0_90] : memref<920x128xf32, #tpu.memory_space<vmem>>, vector<1x32xf32>
    %276 = vector.broadcast %275 : vector<1x32xf32> to vector<16x32xf32>
    %277 = arith.mulf %274, %276 : vector<16x32xf32>
    %c680 = arith.constant 680 : index
    %c0_91 = arith.constant 0 : index
    %278 = vector.load %arg2[%c680, %c0_91] : memref<920x128xf32, #tpu.memory_space<vmem>>, vector<1x32xf32>
    %279 = vector.broadcast %278 : vector<1x32xf32> to vector<16x32xf32>
    %280 = arith.addf %277, %279 : vector<16x32xf32>
    %281 = vector.extract_strided_slice %280 {offsets = [0, 0], sizes = [8, 32], strides = [1, 1]} : vector<16x32xf32> to vector<8x32xf32>
    %282 = vector.extract_strided_slice %280 {offsets = [8, 0], sizes = [8, 32], strides = [1, 1]} : vector<16x32xf32> to vector<8x32xf32>
    %c688 = arith.constant 688 : index
    %c0_92 = arith.constant 0 : index
    %283 = vector.load %arg2[%c688, %c0_92] : memref<920x128xf32, #tpu.memory_space<vmem>>, vector<32x32xf32>
    %cst_93 = arith.constant dense<0.000000e+00> : vector<8x32xf32>
    %284 = tpu.matmul %281, %283, %cst_93 {dimension_numbers = #tpu.dot_dimension_numbers<[1], [0], [0], [1], [0, 0, 1, 1], [], []>} : vector<8x32xf32>, vector<32x32xf32>, vector<8x32xf32> -> vector<8x32xf32>
    %c720 = arith.constant 720 : index
    %c0_94 = arith.constant 0 : index
    %285 = vector.load %arg2[%c720, %c0_94] : memref<920x128xf32, #tpu.memory_space<vmem>>, vector<32x32xf32>
    %cst_95 = arith.constant dense<0.000000e+00> : vector<8x32xf32>
    %286 = tpu.matmul %282, %285, %cst_95 {dimension_numbers = #tpu.dot_dimension_numbers<[1], [0], [0], [1], [0, 0, 1, 1], [], []>} : vector<8x32xf32>, vector<32x32xf32>, vector<8x32xf32> -> vector<8x32xf32>
    %287 = arith.addf %284, %286 : vector<8x32xf32>
    %c752 = arith.constant 752 : index
    %c0_96 = arith.constant 0 : index
    %288 = vector.load %arg2[%c752, %c0_96] : memref<920x128xf32, #tpu.memory_space<vmem>>, vector<1x32xf32>
    %289 = vector.broadcast %288 : vector<1x32xf32> to vector<8x32xf32>
    %290 = arith.addf %287, %289 : vector<8x32xf32>
    %cst_97 = arith.constant dense<0.000000e+00> : vector<8xf32>
    %291 = vector.multi_reduction <add>, %290, %cst_97 [1] : vector<8x32xf32> to vector<8xf32>
    %292 = vector.shape_cast %291 : vector<8xf32> to vector<8x1xf32>
    %cst_98 = arith.constant 3.200000e+01 : f32
    %293 = vector.broadcast %cst_98 : f32 to vector<8x1xf32>
    %294 = arith.divf %292, %293 : vector<8x1xf32>
    %295 = vector.broadcast %294 : vector<8x1xf32> to vector<8x32xf32>
    %296 = arith.subf %290, %295 : vector<8x32xf32>
    %297 = arith.mulf %296, %296 : vector<8x32xf32>
    %cst_99 = arith.constant dense<0.000000e+00> : vector<8xf32>
    %298 = vector.multi_reduction <add>, %297, %cst_99 [1] : vector<8x32xf32> to vector<8xf32>
    %299 = vector.shape_cast %298 : vector<8xf32> to vector<8x1xf32>
    %cst_100 = arith.constant 3.200000e+01 : f32
    %300 = vector.broadcast %cst_100 : f32 to vector<8x1xf32>
    %301 = arith.divf %299, %300 : vector<8x1xf32>
    %302 = vector.broadcast %294 : vector<8x1xf32> to vector<8x32xf32>
    %303 = arith.subf %290, %302 : vector<8x32xf32>
    %cst_101 = arith.constant 9.99999974E-6 : f32
    %304 = vector.broadcast %cst_101 : f32 to vector<8x1xf32>
    %305 = arith.addf %301, %304 : vector<8x1xf32>
    %306 = math.rsqrt %305 : vector<8x1xf32>
    %cst_102 = arith.constant 5.000000e-01 : f32
    %307 = vector.broadcast %cst_102 : f32 to vector<8x1xf32>
    %308 = arith.mulf %307, %305 : vector<8x1xf32>
    %309 = arith.mulf %308, %306 : vector<8x1xf32>
    %310 = arith.mulf %309, %306 : vector<8x1xf32>
    %cst_103 = arith.constant 1.500000e+00 : f32
    %311 = vector.broadcast %cst_103 : f32 to vector<8x1xf32>
    %312 = arith.subf %311, %310 : vector<8x1xf32>
    %313 = arith.mulf %306, %312 : vector<8x1xf32>
    %314 = vector.broadcast %313 : vector<8x1xf32> to vector<8x32xf32>
    %315 = arith.mulf %303, %314 : vector<8x32xf32>
    %c760 = arith.constant 760 : index
    %c0_104 = arith.constant 0 : index
    %316 = vector.load %arg2[%c760, %c0_104] : memref<920x128xf32, #tpu.memory_space<vmem>>, vector<1x32xf32>
    %317 = vector.broadcast %316 : vector<1x32xf32> to vector<8x32xf32>
    %318 = arith.mulf %315, %317 : vector<8x32xf32>
    %c768 = arith.constant 768 : index
    %c0_105 = arith.constant 0 : index
    %319 = vector.load %arg2[%c768, %c0_105] : memref<920x128xf32, #tpu.memory_space<vmem>>, vector<1x32xf32>
    %320 = vector.broadcast %319 : vector<1x32xf32> to vector<8x32xf32>
    %321 = arith.addf %318, %320 : vector<8x32xf32>
    %c776 = arith.constant 776 : index
    %c0_106 = arith.constant 0 : index
    %322 = vector.load %arg2[%c776, %c0_106] : memref<920x128xf32, #tpu.memory_space<vmem>>, vector<32x32xf32>
    %cst_107 = arith.constant dense<0.000000e+00> : vector<8x32xf32>
    %323 = tpu.matmul %321, %322, %cst_107 {dimension_numbers = #tpu.dot_dimension_numbers<[1], [0], [0], [1], [0, 0, 1, 1], [], []>} : vector<8x32xf32>, vector<32x32xf32>, vector<8x32xf32> -> vector<8x32xf32>
    %c808 = arith.constant 808 : index
    %c0_108 = arith.constant 0 : index
    %324 = vector.load %arg2[%c808, %c0_108] : memref<920x128xf32, #tpu.memory_space<vmem>>, vector<1x32xf32>
    %325 = vector.broadcast %324 : vector<1x32xf32> to vector<8x32xf32>
    %326 = arith.addf %323, %325 : vector<8x32xf32>
    %cst_109 = arith.constant dense<0.000000e+00> : vector<8xf32>
    %327 = vector.multi_reduction <add>, %326, %cst_109 [1] : vector<8x32xf32> to vector<8xf32>
    %328 = vector.shape_cast %327 : vector<8xf32> to vector<8x1xf32>
    %cst_110 = arith.constant 3.200000e+01 : f32
    %329 = vector.broadcast %cst_110 : f32 to vector<8x1xf32>
    %330 = arith.divf %328, %329 : vector<8x1xf32>
    %331 = vector.broadcast %330 : vector<8x1xf32> to vector<8x32xf32>
    %332 = arith.subf %326, %331 : vector<8x32xf32>
    %333 = arith.mulf %332, %332 : vector<8x32xf32>
    %cst_111 = arith.constant dense<0.000000e+00> : vector<8xf32>
    %334 = vector.multi_reduction <add>, %333, %cst_111 [1] : vector<8x32xf32> to vector<8xf32>
    %335 = vector.shape_cast %334 : vector<8xf32> to vector<8x1xf32>
    %cst_112 = arith.constant 3.200000e+01 : f32
    %336 = vector.broadcast %cst_112 : f32 to vector<8x1xf32>
    %337 = arith.divf %335, %336 : vector<8x1xf32>
    %338 = vector.broadcast %330 : vector<8x1xf32> to vector<8x32xf32>
    %339 = arith.subf %326, %338 : vector<8x32xf32>
    %cst_113 = arith.constant 9.99999974E-6 : f32
    %340 = vector.broadcast %cst_113 : f32 to vector<8x1xf32>
    %341 = arith.addf %337, %340 : vector<8x1xf32>
    %342 = math.rsqrt %341 : vector<8x1xf32>
    %cst_114 = arith.constant 5.000000e-01 : f32
    %343 = vector.broadcast %cst_114 : f32 to vector<8x1xf32>
    %344 = arith.mulf %343, %341 : vector<8x1xf32>
    %345 = arith.mulf %344, %342 : vector<8x1xf32>
    %346 = arith.mulf %345, %342 : vector<8x1xf32>
    %cst_115 = arith.constant 1.500000e+00 : f32
    %347 = vector.broadcast %cst_115 : f32 to vector<8x1xf32>
    %348 = arith.subf %347, %346 : vector<8x1xf32>
    %349 = arith.mulf %342, %348 : vector<8x1xf32>
    %350 = vector.broadcast %349 : vector<8x1xf32> to vector<8x32xf32>
    %351 = arith.mulf %339, %350 : vector<8x32xf32>
    %c816 = arith.constant 816 : index
    %c0_116 = arith.constant 0 : index
    %352 = vector.load %arg2[%c816, %c0_116] : memref<920x128xf32, #tpu.memory_space<vmem>>, vector<1x32xf32>
    %353 = vector.broadcast %352 : vector<1x32xf32> to vector<8x32xf32>
    %354 = arith.mulf %351, %353 : vector<8x32xf32>
    %c824 = arith.constant 824 : index
    %c0_117 = arith.constant 0 : index
    %355 = vector.load %arg2[%c824, %c0_117] : memref<920x128xf32, #tpu.memory_space<vmem>>, vector<1x32xf32>
    %356 = vector.broadcast %355 : vector<1x32xf32> to vector<8x32xf32>
    %357 = arith.addf %354, %356 : vector<8x32xf32>
    %c832 = arith.constant 832 : index
    %c0_118 = arith.constant 0 : index
    %358 = vector.load %arg2[%c832, %c0_118] : memref<920x128xf32, #tpu.memory_space<vmem>>, vector<32x128xf32>
    %cst_119 = arith.constant dense<0.000000e+00> : vector<8x128xf32>
    %359 = tpu.matmul %357, %358, %cst_119 {dimension_numbers = #tpu.dot_dimension_numbers<[1], [0], [0], [1], [0, 0, 1, 1], [], []>} : vector<8x32xf32>, vector<32x128xf32>, vector<8x128xf32> -> vector<8x128xf32>
    %c864 = arith.constant 864 : index
    %c0_120 = arith.constant 0 : index
    %360 = vector.load %arg2[%c864, %c0_120] : memref<920x128xf32, #tpu.memory_space<vmem>>, vector<1x128xf32>
    %361 = vector.broadcast %360 : vector<1x128xf32> to vector<8x128xf32>
    %362 = arith.addf %359, %361 : vector<8x128xf32>
    %363 = vector.extract_strided_slice %362 {offsets = [0, 0], sizes = [8, 1], strides = [1, 1]} : vector<8x128xf32> to vector<8x1xf32>
    %c872 = arith.constant 872 : index
    %c0_121 = arith.constant 0 : index
    %364 = vector.load %arg2[%c872, %c0_121] : memref<920x128xf32, #tpu.memory_space<vmem>>, vector<32x128xf32>
    %cst_122 = arith.constant dense<0.000000e+00> : vector<8x128xf32>
    %365 = tpu.matmul %357, %364, %cst_122 {dimension_numbers = #tpu.dot_dimension_numbers<[1], [0], [0], [1], [0, 0, 1, 1], [], []>} : vector<8x32xf32>, vector<32x128xf32>, vector<8x128xf32> -> vector<8x128xf32>
    %c0_123 = arith.constant 0 : index
    %c0_124 = arith.constant 0 : index
    %366 = vector.load %arg1[%c0_123, %c0_124] : memref<8x8xf32, #tpu.memory_space<vmem>>, vector<8x8xf32>
    %c904 = arith.constant 904 : index
    %c0_125 = arith.constant 0 : index
    %367 = vector.load %arg2[%c904, %c0_125] : memref<920x128xf32, #tpu.memory_space<vmem>>, vector<8x128xf32>
    %cst_126 = arith.constant dense<0.000000e+00> : vector<8x128xf32>
    %368 = tpu.matmul %366, %367, %cst_126 {dimension_numbers = #tpu.dot_dimension_numbers<[1], [0], [0], [1], [0, 0, 1, 1], [], []>} : vector<8x8xf32>, vector<8x128xf32>, vector<8x128xf32> -> vector<8x128xf32>
    %369 = arith.addf %365, %368 : vector<8x128xf32>
    %c912 = arith.constant 912 : index
    %c0_127 = arith.constant 0 : index
    %370 = vector.load %arg2[%c912, %c0_127] : memref<920x128xf32, #tpu.memory_space<vmem>>, vector<1x128xf32>
    %371 = vector.broadcast %370 : vector<1x128xf32> to vector<8x128xf32>
    %372 = arith.addf %369, %371 : vector<8x128xf32>
    %cst_128 = arith.constant 0.000000e+00 : f32
    %373 = vector.broadcast %cst_128 : f32 to vector<8x128xf32>
    %374 = arith.cmpf ogt, %372, %373 : vector<8x128xf32>
    %cst_129 = arith.constant 0.00999999977 : f32
    %375 = vector.broadcast %cst_129 : f32 to vector<8x128xf32>
    %376 = arith.mulf %375, %372 : vector<8x128xf32>
    %377 = arith.select %374, %372, %376 : vector<8x128xi1>, vector<8x128xf32>
    %378 = vector.shape_cast %377 : vector<8x128xf32> to vector<1x8x128xf32>
    %cst_130 = arith.constant dense<0.000000e+00> : vector<1xf32>
    %379 = vector.multi_reduction <add>, %378, %cst_130 [1, 2] : vector<1x8x128xf32> to vector<1xf32>
    %380 = vector.shape_cast %379 : vector<1xf32> to vector<1x1x1xf32>
    %381 = vector.extract %380[0, 0, 0] : f32 from vector<1x1x1xf32>
    %382 = vector.broadcast %381 : f32 to vector<1x1xf32>
    %cst_131 = arith.constant 3.906250e-03 : f32
    %383 = vector.broadcast %cst_131 : f32 to vector<1x1xf32>
    %384 = arith.mulf %382, %383 : vector<1x1xf32>
    %385 = vector.broadcast %363 : vector<8x1xf32> to vector<8x128xf32>
    %386 = arith.addf %385, %377 : vector<8x128xf32>
    %387 = vector.broadcast %384 : vector<1x1xf32> to vector<8x128xf32>
    %388 = arith.subf %386, %387 : vector<8x128xf32>
    %c0_132 = arith.constant 0 : index
    %c0_133 = arith.constant 0 : index
    %389 = vector.load %arg3[%c0_132, %c0_133] : memref<8x128xf32, #tpu.memory_space<vmem>>, vector<8x128xf32>
    tpu.vector_store %arg3[%c0_132, %c0_133], %388 {strides = array<i32>} : memref<8x128xf32, #tpu.memory_space<vmem>>, vector<8x128xf32>,
    return
  }
}

</mosaic_0001>

<bundles_post_ra>
// kernel: forward_packed.1
= control target key start
LH: loop header
LB: loop body
LE: loop exit
PB: predicated region body
PF: predicated region fallthrough
CT: control target
= control target key end

     0   :  { %8 = vsyncpa [#allocation3], 0  ;;  %s2687_s0 = inlined_call_operand.vmem [shape: f32[16,32], index: 0, kind: input, shape index: {}]   ;;  %s2688_s1 = inlined_call_operand.vmem [shape: f32[8,8], index: 1, kind: input, shape index: {}]   ;;  %s2689_s2 = inlined_call_operand.hbm [shape: f32[920,128], index: 2, kind: input, shape index: {}]   ;;  %s2690_s3 = inlined_call_operand.hbm [shape: f32[8,128], index: 3, kind: output, shape index: {}]  }
   0x1   :  { %9 = vsyncpa [#allocation4], 0  ;;  %s2530_s12 = smov [#allocation2]   ;;  %s2482_s16 = scalar_lea.hbm %s2689_s2, 14720 }
   0x2   :  { %s19_s13 = sshll.u32 %s2530_s12, 4  ;;  %p2483_p0 = scmp.ne.s32.totalorder %s2689_s2, %s2482_s16  ;;  %s20_s13 = int_to_ptr.vmem [resolvable:$true] %s19_s13 }
   0x3   :  { %p2486_p1 = scmp.lt.u32.totalorder %s2482_s16, %s2689_s2 }
   0x5   :  { %p2488_p2 = pnand %p2486_p1, %p2483_p0 }
   0x7   :  { %2491 = shalt.err (!%p2488_p2)
}
   0x8   :  { %s2492_s21 = scalar_lea.vmem %s20_s13, 14720  ;;  %p2497_p4 = scmp.lt.s32.totalorder %s20_s13, %s20_s13 }
   0x9   :  { %p2493_p3 = scmp.ne.s32.totalorder %s20_s13, %s2492_s21  ;;  %p2498_p5 = scmp.lt.s32.totalorder %s2492_s21, %s2492_s21 }
   0xb   :  { %p2499_p6 = por %p2498_p5, %p2497_p4 }
   0xd   :  { %p2500_p7 = pnand %p2499_p6, %p2493_p3 }
   0xf   :  { %2503 = shalt.err (!%p2500_p7)
}
  0x10   :  { %s2531_s22 = smov 128   ;;  %s2532_s23 = smov 8  }
  0x11   :  { %25 = dma.hbm_to_vmem [thread:$0]  %s2689_s2, 14720, %s20_s13, [#allocation3], %s2531_s22, %s2531_s22, %s2532_s23  }
  0x12   :  { %2526 = dma.done.wait [#allocation3], 14720  }
  0x13   :  { %2527 = vsyncadd [#allocation3], 4294952576  ;;  %v31_v0 = vld [vmem:[#allocation2] sm:$0xff]  ;;  %v32_v1 = vld [vmem:[#allocation2 + $0x8] sm:$0xff]  ;;  %vm40_vm0 = vcmask 261120   ;;  %vm2534_vm1 = vmmov 0  }
  0x14   :  { %v122_v2 = vld [vmem:[#allocation2 + $0x20] sm:$0xff]  ;;  %v2260_v3 = vpack.c.bf16 %v32_v1, %v31_v0  ;;  %v123_v4 = vld [vmem:[#allocation2 + $0x28] sm:$0xff]  ;;  %v33_v5 = vld [vmem:[#allocation2 + $0x10] sm:$0xff]  ;;  %vm1692_vm2 = vcmask 64512   ;;  %s2537_s30 = smov [#allocation5]  }
  0x15   :  { %v34_v6 = vld [vmem:[#allocation2 + $0x18] sm:$0xff]  ;;  %v2268_v7 = vpack.c.bf16 %v123_v4, %v122_v2  ;;  %v124_v9 = vld [vmem:[#allocation2 + $0x30] sm:$0xff]  ;;  %v2573_v11 = vld [vmem:[%s2687_s0] sm:$0xff]  ;;  %s1870_s4 = sshll.u32 %s2537_s30, 4  ;;  %s1871_s4 = int_to_ptr.vmem [resolvable:$true] %s1870_s4 }
  0x16   :  { %v2264_v8 = vpack.c.bf16 %v34_v6, %v33_v5  ;;  %v125_v10 = vld [vmem:[#allocation2 + $0x38] sm:$0xff]  ;;  %2261 = vmatprep.subr.bf16.mxu0 %v2260_v3  ;;  %2050 = vmatprep.mubr.msk.f32.mxu0 %vm40_vm0, %v2573_v11  ;;  %v206_v13 = vld [vmem:[#allocation2 + $0x40] sm:$0xff]  ;;  %v207_v14 = vld [vmem:[#allocation2 + $0x48] sm:$0xff]  ;;  %s2504_s5 = scalar_lea.vmem %s1871_s4, 128  ;;  %p2509_p9 = scmp.lt.s32.totalorder %s1871_s4, %s1871_s4 }
  0x17   :  { %v2272_v12 = vpack.c.bf16 %v125_v10, %v124_v9  ;;  %2269 = vmatprep.subr.bf16.mxu1 %v2268_v7  ;;  %2263 = vmatpush3.bf16.msra.mxu0 %v2260_v3  ;;  %v2276_v15 = vpack.c.bf16 %v207_v14, %v206_v13  ;;  %v208_v16 = vld [vmem:[#allocation2 + $0x50] sm:$0xff]  ;;  %v209_v17 = vld [vmem:[#allocation2 + $0x58] sm:$0xff]  ;;  %v2582_v18 = vld [vmem:[%s2687_s0 + $0x8] sm:$0xff]  ;;  %p2505_p8 = scmp.ne.s32.totalorder %s1871_s4, %s2504_s5  ;;  %p2510_p10 = scmp.lt.s32.totalorder %s2504_s5, %s2504_s5 }
  0x18   :  { %2271 = vmatpush3.bf16.msra.mxu1 %v2268_v7  ;;  %2265 = vmatprep.subr.bf16.mxu0 %v2264_v8  ;;  %v2280_v19 = vpack.c.bf16 %v209_v17, %v208_v16  ;;  %v1879_v20 = vld [vmem:[#allocation2 + $0x60] ss:$0 sm:$0xff]  ;;  %v1882_v21 = vld [vmem:[#allocation2 + $0x68] ss:$0 sm:$0xff]  ;;  %v1885_v54 = vld [vmem:[#allocation2 + $0x70] ss:$0 sm:$0xff] }
  0x19   :  { %2273 = vmatprep.subr.bf16.mxu1 %v2272_v12  ;;  %2061 = vmatprep.mubr.msk.f32.mxu1 %vm40_vm0, %v2573_v11  ;;  %p2511_p11 = por %p2510_p10, %p2509_p9 }
  0x1b   :  { %2267 = vmatpush3.bf16.msra.mxu0 %v2264_v8  ;;  %p2512_p12 = pnand %p2511_p11, %p2505_p8 }
  0x1c   :  { %2275 = vmatpush3.bf16.msra.mxu1 %v2272_v12  ;;  %2277 = vmatprep.subr.bf16.mxu0 %v2276_v15 }
  0x1e   :  { %2051 = vmatmul.mubr.msk.f32.vlgmr.msra.gmra.mrb[0].mxu0 %vm40_vm0, %v2582_v18 }
  0x1f   :  { %2062 = vmatmul.mubr.msk.f32.vlgmr.msra.gmra.mrb[0].mxu1 %vm40_vm0, %v2582_v18  ;;  %2279 = vmatpush3.bf16.msra.mxu0 %v2276_v15 }
  0x20   :  { %2281 = vmatprep.subr.bf16.mxu0 %v2280_v19  ;;  %2072 = vmatprep.mubr.msk.f32.mxu0 %vm40_vm0, %v2573_v11 }
  0x23   :  { %2283 = vmatpush3.bf16.msra.mxu0 %v2280_v19 }
  0x26   :  { %2073 = vmatmul.mubr.msk.f32.vlgmr.msra.gmra.mrb[2].mxu0 %vm40_vm0, %v2582_v18 }
  0xf1   :  { %v2052_v22 = vpop.f32.mrb[0].mxu0 }
  0xf2   :  { %v119_v23 = vadd.f32 %v2052_v22, %v1879_v20  ;;  %v2063_v24 = vpop.f32.mrb[0].mxu1  ;;  %v113_v25 = vpop.f32.mrb[1].mxu0 }
  0xf3   :  { %v203_v26 = vadd.f32 %v2063_v24, %v1882_v21  ;;  %v114_v27 = vadd.f32 %v1879_v20, %v113_v25  ;;  %v197_v28 = vpop.f32.mrb[1].mxu1  ;;  %v385_v24 = vld [vmem:[#allocation2 + $0x88] sm:$0xff] }
  0xf4   :  { %v198_v29 = vadd.f32 %v1882_v21, %v197_v28 }
  0xf5   :  { %v291_v30 = vmul.f32 %v203_v26, %v119_v23  ;;  %v298_v31 = vmul.f32 %v203_v26, %v114_v27  ;;  %v387_v26 = vld [vmem:[#allocation2 + $0x98] sm:$0xff] }
  0xf6   :  { %v290_v32 = vmul.f32 %v198_v29, %v114_v27  ;;  %v299_v33 = vmul.f32 %v198_v29, %v119_v23  ;;  %v388_v27 = vld [vmem:[#allocation2 + $0xa0] sm:$0xff] }
  0xf7   :  { %v295_v34 = vsel %vm40_vm0, %v291_v30, 0.0  ;;  %v300_v37 = vsel %vm40_vm0, %v298_v31, 0.0  ;;  %v2288_v28 = vpack.c.bf16 %v388_v27, %v387_v26  ;;  %v537_v26 = vld [vmem:[#allocation2 + $0x138] sm:$0xff] }
  0xf8   :  { %296 = vadd.xlane.f32.xlu1 %v295_v34  ;;  %v292_v35 = vsel %vm40_vm0, %v290_v32, 0.0  ;;  %v303_v36 = vsel %vm40_vm0, %v299_v33, 0.0 }
  0xf9   :  { %293 = vadd.xlane.f32.xlu0 %v292_v35  ;;  %v2074_v38 = vpop.f32.mrb[2].mxu0 }
  0xfa   :  { %v281_v39 = vpop.f32.mrb[3].mxu0  ;;  %v287_v55 = vadd.f32 %v2074_v38, %v1885_v54 }
  0xfb   :  { %v282_v56 = vadd.f32 %v1885_v54, %v281_v39 }
  0xfc   :  { %304 = vadd.xlane.f32.xlu1 %v303_v36 }
  0xfd   :  { %301 = vadd.xlane.f32.xlu0 %v300_v37 }
 0x185   :  { %v297_v40 = vpop.xlane.xlu1 %296 }
 0x186   :  { %v294_v41 = vpop.xlane.xlu0 %293 }
 0x189   :  { %v305_v42 = vpop.xlane.xlu1 %304 }
 0x18a   :  { %v307_v43 = vmax.f32 %v297_v40, %v305_v42  ;;  %v302_v44 = vpop.xlane.xlu0 %301 }
 0x18b   :  { %v306_v45 = vmax.f32 %v294_v41, %v302_v44 }
 0x18c   :  { %v309_v46 = vsub.f32 %v297_v40, %v307_v43  ;;  %v315_v47 = vsub.f32 %v305_v42, %v307_v43 }
 0x18d   :  { %v308_v48 = vsub.f32 %v294_v41, %v306_v45  ;;  %v314_v49 = vsub.f32 %v302_v44, %v306_v45 }
 0x18e   :  { %v312_v50 = vmul.f32 1.442695, %v309_v46  ;;  %v318_v51 = vmul.f32 1.442695, %v315_v47 }
 0x18f   :  { %v310_v52 = vmul.f32 1.442695, %v308_v48  ;;  %v316_v53 = vmul.f32 1.442695, %v314_v49  ;;  %v1888_v48 = vld [vmem:[#allocation2 + $0x78] ss:$0 sm:$0xff] }
 0x190   :  { %2430 = vpow2.f32 %v312_v50 }
 0x191   :  { %2432 = vpow2.f32 %v318_v51  ;;  %v1889_v51 = vld [vmem:[#allocation2 + $0x80] ss:$0 sm:$0xff] }
 0x192   :  { %2434 = vpow2.f32 %v310_v52 }
 0x193   :  { %2436 = vpow2.f32 %v316_v53 }
 0x19a   :  { %v2431_v57 = vpop.eup %2430 }
 0x19b   :  { %v2433_v58 = vpop.eup %2432  ;;  %v321_v59 = vmul.f32 %v2431_v57, %v287_v55 }
 0x19c   :  { %v2435_v60 = vpop.eup %2434  ;;  %v327_v61 = vadd.f32 %v2433_v58, %v2431_v57  ;;  %v323_v62 = vmul.f32 %v2433_v58, %v282_v56 }
 0x19d   :  { %v2437_v63 = vpop.eup %2436  ;;  %v320_v0 = vmul.f32 %v2435_v60, %v282_v56 }
 0x19e   :  { %2438 = vrcp.f32 %v327_v61  ;;  %v326_v1 = vadd.f32 %v2437_v63, %v2435_v60  ;;  %v322_v2 = vmul.f32 %v2437_v63, %v287_v55  ;;  %v325_v3 = vadd.f32 %v323_v62, %v321_v59  ;;  %v1890_v55 = vld [vmem:[#allocation2 + $0xa8] ss:$0 sm:$0xff]  ;;  %v522_v60 = vld [vmem:[#allocation2 + $0xc0] sm:$0xff] }
 0x19f   :  { %v523_v61 = vld [vmem:[#allocation2 + $0xc8] sm:$0xff] }
 0x1a0   :  { %2440 = vrcp.f32 %v326_v1  ;;  %v324_v4 = vadd.f32 %v322_v2, %v320_v0  ;;  %v2292_v62 = vpack.c.bf16 %v523_v61, %v522_v60 }
 0x1a2   :  { %2293 = vmatprep.subr.bf16.mxu0 %v2292_v62 }
 0x1a3   :  { %2295 = vmatpush3.bf16.msra.mxu0 %v2292_v62 }
 0x1a8   :  { %v2439_v5 = vpop.eup %2438 }
 0x1a9   :  { %v331_v6 = vmul.f32 %v2439_v5, %v325_v3 }
 0x1aa   :  { %v2441_v7 = vpop.eup %2440 }
 0x1ab   :  { %v333_v8 = vadd.f32 %v331_v6, %v2582_v18  ;;  %v329_v9 = vmul.f32 %v2441_v7, %v324_v4  ;;  %v524_v7 = vld [vmem:[#allocation2 + $0xd0] sm:$0xff] }
 0x1ad   :  { %v337_v10 = vsel %vm40_vm0, %v333_v8, 0.0  ;;  %v332_v12 = vadd.f32 %v329_v9, %v2573_v11  ;;  %v386_v11 = vld [vmem:[#allocation2 + $0x90] sm:$0xff] }
 0x1ae   :  { %338 = vadd.xlane.f32.xlu1 %v337_v10  ;;  %v2284_v25 = vpack.c.bf16 %v386_v11, %v385_v24  ;;  %v526_v10 = vld [vmem:[#allocation2 + $0xe0] sm:$0xff]  ;;  %v535_v24 = vld [vmem:[#allocation2 + $0x128] sm:$0xff] }
 0x1af   :  { %v334_v13 = vsel %vm40_vm0, %v332_v12, 0.0 }
 0x1b0   :  { %335 = vadd.xlane.f32.xlu0 %v334_v13  ;;  %2285 = vmatprep.subr.bf16.mxu1 %v2284_v25 }
 0x1b1   :  { %2287 = vmatpush3.bf16.msra.mxu1 %v2284_v25  ;;  %v536_v25 = vld [vmem:[#allocation2 + $0x130] sm:$0xff] }
 0x1b2   :  { %2289 = vmatprep.subr.bf16.mxu1 %v2288_v28  ;;  %v2320_v27 = vpack.c.bf16 %v537_v26, %v536_v25 }
 0x1b5   :  { %2291 = vmatpush3.bf16.msra.mxu1 %v2288_v28 }
 0x23b   :  { %v339_v14 = vpop.xlane.xlu1 %338 }
 0x23c   :  { %v342_v15 = vmul.f32 0.03125, %v339_v14  ;;  %v528_v14 = vld [vmem:[#allocation2 + $0xf0] sm:$0xff] }
 0x23d   :  { %v336_v16 = vpop.xlane.xlu0 %335 }
 0x23e   :  { %v344_v17 = vsub.f32 %v333_v8, %v342_v15  ;;  %v341_v19 = vmul.f32 0.03125, %v336_v16  ;;  %v525_v8 = vld [vmem:[#allocation2 + $0xd8] sm:$0xff] }
 0x23f   :  { %v2296_v9 = vpack.c.bf16 %v525_v8, %v524_v7  ;;  %v529_v15 = vld [vmem:[#allocation2 + $0xf8] sm:$0xff]  ;;  %v669_v8 = vld [vmem:[#allocation2 + $0x160] sm:$0xff] }
 0x240   :  { %v343_v20 = vsub.f32 %v332_v12, %v341_v19  ;;  %v346_v21 = vmul.f32 %v344_v17, %v344_v17  ;;  %v527_v12 = vld [vmem:[#allocation2 + $0xe8] sm:$0xff]  ;;  %v2304_v16 = vpack.c.bf16 %v529_v15, %v528_v14  ;;  %v668_v7 = vld [vmem:[#allocation2 + $0x158] sm:$0xff]  ;;  %v759_v15 = vld [vmem:[#allocation2 + $0x180] sm:$0xff] }
 0x241   :  { %2297 = vmatprep.subr.bf16.mxu0 %v2296_v9  ;;  %v2300_v13 = vpack.c.bf16 %v527_v12, %v526_v10  ;;  %v531_v19 = vld [vmem:[#allocation2 + $0x108] sm:$0xff]  ;;  %v671_v12 = vld [vmem:[#allocation2 + $0x170] sm:$0xff]  ;;  %v758_v14 = vld [vmem:[#allocation2 + $0x178] sm:$0xff] }
 0x242   :  { %v350_v22 = vsel %vm40_vm0, %v346_v21, 0.0  ;;  %v345_v23 = vmul.f32 %v343_v20, %v343_v20  ;;  %2299 = vmatpush3.bf16.msra.mxu0 %v2296_v9  ;;  %v532_v21 = vld [vmem:[#allocation2 + $0x110] sm:$0xff]  ;;  %v2324_v9 = vpack.c.bf16 %v669_v8, %v668_v7  ;;  %v670_v10 = vld [vmem:[#allocation2 + $0x168] sm:$0xff] }
 0x243   :  { %351 = vadd.xlane.f32.xlu1 %v350_v22  ;;  %2301 = vmatprep.subr.bf16.mxu0 %v2300_v13  ;;  %v533_v22 = vld [vmem:[#allocation2 + $0x118] sm:$0xff] }
 0x244   :  { %v347_v18 = vsel %vm40_vm0, %v345_v23, 0.0  ;;  %v2312_v23 = vpack.c.bf16 %v533_v22, %v532_v21  ;;  %2325 = vmatprep.subr.bf16.mxu1 %v2324_v9 }
 0x245   :  { %348 = vadd.xlane.f32.xlu0 %v347_v18  ;;  %v534_v18 = vld [vmem:[#allocation2 + $0x120] sm:$0xff] }
 0x246   :  { %2303 = vmatpush3.bf16.msra.mxu0 %v2300_v13  ;;  %v2316_v11 = vpack.c.bf16 %v535_v24, %v534_v18  ;;  %v2328_v13 = vpack.c.bf16 %v671_v12, %v670_v10 }
 0x247   :  { %2305 = vmatprep.subr.bf16.mxu0 %v2304_v16 }
 0x24a   :  { %2307 = vmatpush3.bf16.msra.mxu0 %v2304_v16  ;;  %v2332_v16 = vpack.c.bf16 %v759_v15, %v758_v14 }
 0x2d0   :  { %v352_v29 = vpop.xlane.xlu1 %351 }
 0x2d1   :  { %v354_v30 = vmul.f32 0.03125, %v352_v29 }
 0x2d2   :  { %v349_v31 = vpop.xlane.xlu0 %348 }
 0x2d3   :  { %v356_v32 = vadd.f32 1e-05, %v354_v30  ;;  %v353_v33 = vmul.f32 0.03125, %v349_v31 }
 0x2d5   :  { %2442 = vrsqrt.f32 %v356_v32  ;;  %v355_v34 = vadd.f32 1e-05, %v353_v33  ;;  %v360_v35 = vmul.f32 0.5, %v356_v32 }
 0x2d7   :  { %2444 = vrsqrt.f32 %v355_v34  ;;  %v359_v38 = vmul.f32 0.5, %v355_v34 }
 0x2df   :  { %v2443_v36 = vpop.eup %2442 }
 0x2e0   :  { %v362_v37 = vmul.f32 %v2443_v36, %v360_v35 }
 0x2e1   :  { %v2445_v39 = vpop.eup %2444 }
 0x2e2   :  { %v364_v40 = vmul.f32 %v2443_v36, %v362_v37  ;;  %v361_v41 = vmul.f32 %v2445_v39, %v359_v38 }
 0x2e4   :  { %v366_v42 = vsub.f32 1.5, %v364_v40  ;;  %v363_v43 = vmul.f32 %v2445_v39, %v361_v41 }
 0x2e6   :  { %v368_v44 = vmul.f32 %v2443_v36, %v366_v42  ;;  %v365_v45 = vsub.f32 1.5, %v363_v43 }
 0x2e8   :  { %v370_v46 = vmul.f32 %v368_v44, %v344_v17  ;;  %v367_v47 = vmul.f32 %v2445_v39, %v365_v45  ;;  %v530_v17 = vld [vmem:[#allocation2 + $0x100] sm:$0xff] }
 0x2ea   :  { %v369_v49 = vmul.f32 %v367_v47, %v343_v20  ;;  %v377_v50 = vmul.f32 %v1888_v48, %v370_v46  ;;  %v2308_v20 = vpack.c.bf16 %v531_v19, %v530_v17  ;;  %v1893_v46 = vld [vmem:[#allocation2 + $0xb0] ss:$0 sm:$0xff] }
 0x2ec   :  { %v376_v52 = vmul.f32 %v1888_v48, %v369_v49  ;;  %v384_v54 = vadd.f32 %v1889_v51, %v377_v50  ;;  %2309 = vmatprep.subr.bf16.mxu0 %v2308_v20  ;;  %v1894_v50 = vld [vmem:[#allocation2 + $0xb8] ss:$0 sm:$0xff] }
 0x2ed   :  { %2311 = vmatpush3.bf16.msra.mxu0 %v2308_v20 }
 0x2ee   :  { %v383_v53 = vadd.f32 %v1889_v51, %v376_v52  ;;  %2313 = vmatprep.subr.bf16.mxu0 %v2312_v23 }
 0x2f0   :  { %2083 = vmatprep.mubr.msk.f32.mxu1 %vm40_vm0, %v383_v53 }
 0x2f1   :  { %2084 = vmatmul.mubr.msk.f32.vlgmr.msra.gmra.mrb[2].mxu1 %vm40_vm0, %v384_v54  ;;  %2315 = vmatpush3.bf16.msra.mxu0 %v2312_v23  ;;  %v1895_v54 = vld [vmem:[#allocation2 + $0x140] ss:$0 sm:$0xff] }
 0x2f2   :  { %2317 = vmatprep.subr.bf16.mxu0 %v2316_v11  ;;  %2327 = vmatpush3.bf16.msra.mxu1 %v2324_v9 }
 0x2f3   :  { %2329 = vmatprep.subr.bf16.mxu1 %v2328_v13 }
 0x2f5   :  { %2319 = vmatpush3.bf16.msra.mxu0 %v2316_v11 }
 0x2f6   :  { %2321 = vmatprep.subr.bf16.mxu0 %v2320_v27  ;;  %2331 = vmatpush3.bf16.msra.mxu1 %v2328_v13 }
 0x2f7   :  { %2333 = vmatprep.subr.bf16.mxu1 %v2332_v16 }
 0x2f9   :  { %2323 = vmatpush3.bf16.msra.mxu0 %v2320_v27 }
 0x3c4   :  { %v2085_v56 = vpop.f32.mrb[2].mxu1 }
 0x3c5   :  { %v472_v57 = vadd.f32 %v2085_v56, %v1890_v55  ;;  %v466_v58 = vpop.f32.mrb[3].mxu1 }
 0x3c6   :  { %v467_v59 = vadd.f32 %v1890_v55, %v466_v58 }
 0x3c7   :  { %477 = vadd.xlane.f32.xlu1 %v472_v57 }
 0x3c8   :  { %475 = vadd.xlane.f32.xlu0 %v467_v59 }
 0x454   :  { %v478_v63 = vpop.xlane.xlu1 %477 }
 0x455   :  { %v481_v0 = vmul.f32 0.0078125, %v478_v63  ;;  %v476_v1 = vpop.xlane.xlu0 %475 }
 0x456   :  { %v480_v2 = vmul.f32 0.0078125, %v476_v1 }
 0x457   :  { %v483_v3 = vsub.f32 %v472_v57, %v481_v0 }
 0x458   :  { %v482_v4 = vsub.f32 %v467_v59, %v480_v2 }
 0x459   :  { %v485_v5 = vmul.f32 %v483_v3, %v483_v3 }
 0x45a   :  { %v484_v6 = vmul.f32 %v482_v4, %v482_v4 }
 0x45b   :  { %488 = vadd.xlane.f32.xlu1 %v485_v5 }
 0x45c   :  { %486 = vadd.xlane.f32.xlu0 %v484_v6 }
 0x4e8   :  { %v489_v28 = vpop.xlane.xlu1 %488 }
 0x4e9   :  { %v491_v29 = vmul.f32 0.0078125, %v489_v28  ;;  %v487_v30 = vpop.xlane.xlu0 %486 }
 0x4ea   :  { %v490_v31 = vmul.f32 0.0078125, %v487_v30 }
 0x4eb   :  { %v493_v32 = vadd.f32 1e-05, %v491_v29 }
 0x4ec   :  { %v492_v33 = vadd.f32 1e-05, %v490_v31 }
 0x4ed   :  { %2446 = vrsqrt.f32 %v493_v32  ;;  %v497_v34 = vmul.f32 0.5, %v493_v32 }
 0x4ee   :  { %2448 = vrsqrt.f32 %v492_v33  ;;  %v496_v36 = vmul.f32 0.5, %v492_v33 }
 0x4f7   :  { %v2447_v35 = vpop.eup %2446 }
 0x4f8   :  { %v2449_v37 = vpop.eup %2448  ;;  %v499_v38 = vmul.f32 %v2447_v35, %v497_v34  ;;  %v1896_v34 = vld [vmem:[#allocation2 + $0x148] ss:$0 sm:$0xff] }
 0x4f9   :  { %v498_v39 = vmul.f32 %v2449_v37, %v496_v36 }
 0x4fa   :  { %v501_v40 = vmul.f32 %v2447_v35, %v499_v38  ;;  %v1897_v38 = vld [vmem:[#allocation2 + $0x150] ss:$0 sm:$0xff] }
 0x4fb   :  { %v500_v41 = vmul.f32 %v2449_v37, %v498_v39 }
 0x4fc   :  { %v503_v42 = vsub.f32 1.5, %v501_v40  ;;  %v760_v40 = vld [vmem:[#allocation2 + $0x188] sm:$0xff] }
 0x4fd   :  { %v502_v43 = vsub.f32 1.5, %v500_v41  ;;  %v761_v41 = vld [vmem:[#allocation2 + $0x190] sm:$0xff] }
 0x4fe   :  { %v505_v44 = vmul.f32 %v2447_v35, %v503_v42 }
 0x4ff   :  { %v504_v45 = vmul.f32 %v2449_v37, %v502_v43 }
 0x500   :  { %v507_v47 = vmul.f32 %v505_v44, %v483_v3  ;;  %v2336_v44 = vpack.c.bf16 %v761_v41, %v760_v40 }
 0x501   :  { %v506_v48 = vmul.f32 %v504_v45, %v482_v4  ;;  %v842_v45 = vld [vmem:[#allocation2 + $0x198] sm:$0xff] }
 0x502   :  { %v514_v49 = vmul.f32 %v1893_v46, %v507_v47 }
 0x503   :  { %v513_v51 = vmul.f32 %v1893_v46, %v506_v48  ;;  %v843_v46 = vld [vmem:[#allocation2 + $0x1a0] sm:$0xff]  ;;  %v844_v48 = vld [vmem:[#allocation2 + $0x1a8] sm:$0xff] }
 0x504   :  { %v521_v53 = vadd.f32 %v1894_v50, %v514_v49  ;;  %v2340_v47 = vpack.c.bf16 %v843_v46, %v842_v45  ;;  %v845_v49 = vld [vmem:[#allocation2 + $0x1b0] sm:$0xff] }
 0x505   :  { %v520_v52 = vadd.f32 %v1894_v50, %v513_v51  ;;  %v2344_v50 = vpack.c.bf16 %v845_v49, %v844_v48 }
 0x507   :  { %2118 = vmatprep.mubr.f32.mxu0 %v520_v52 }
 0x508   :  { %2119 = vmatmul.mubr.f32.vlgmr.msra.gmra.mrb[4].mxu0 %v521_v53  ;;  %v1898_v53 = vld [vmem:[#allocation2 + $0x1b8] ss:$0 sm:$0xff] }
 0x5db   :  { %v2120_v55 = vpop.f32.mrb[4].mxu0 }
 0x5dc   :  { %v615_v56 = vadd.f32 %v2120_v55, %v1895_v54  ;;  %v609_v57 = vpop.f32.mrb[5].mxu0 }
 0x5dd   :  { %v610_v58 = vadd.f32 %v1895_v54, %v609_v57  ;;  %v1901_v54 = vld [vmem:[#allocation2 + $0x1c0] ss:$0 sm:$0xff] }
 0x5de   :  { %v621_v59 = vsel %vm40_vm0, %v615_v56, 0.0 }
 0x5df   :  { %622 = vadd.xlane.f32.xlu1 %v621_v59  ;;  %v618_v60 = vsel %vm40_vm0, %v610_v58, 0.0 }
 0x5e0   :  { %619 = vadd.xlane.f32.xlu0 %v618_v60 }
 0x66c   :  { %v623_v61 = vpop.xlane.xlu1 %622 }
 0x66d   :  { %v625_v62 = vmul.f32 0.03125, %v623_v61  ;;  %v620_v63 = vpop.xlane.xlu0 %619 }
 0x66e   :  { %v624_v0 = vmul.f32 0.03125, %v620_v63 }
 0x66f   :  { %v627_v1 = vsub.f32 %v615_v56, %v625_v62 }
 0x670   :  { %v626_v2 = vsub.f32 %v610_v58, %v624_v0 }
 0x671   :  { %v629_v3 = vmul.f32 %v627_v1, %v627_v1 }
 0x672   :  { %v628_v4 = vmul.f32 %v626_v2, %v626_v2 }
 0x673   :  { %v633_v5 = vsel %vm40_vm0, %v629_v3, 0.0 }
 0x674   :  { %634 = vadd.xlane.f32.xlu1 %v633_v5  ;;  %v630_v6 = vsel %vm40_vm0, %v628_v4, 0.0 }
 0x675   :  { %631 = vadd.xlane.f32.xlu0 %v630_v6 }
 0x701   :  { %v635_v17 = vpop.xlane.xlu1 %634 }
 0x702   :  { %v637_v19 = vmul.f32 0.03125, %v635_v17  ;;  %v632_v20 = vpop.xlane.xlu0 %631 }
 0x703   :  { %v636_v21 = vmul.f32 0.03125, %v632_v20 }
 0x704   :  { %v639_v22 = vadd.f32 1e-05, %v637_v19 }
 0x705   :  { %v638_v23 = vadd.f32 1e-05, %v636_v21 }
 0x706   :  { %2450 = vrsqrt.f32 %v639_v22  ;;  %v643_v18 = vmul.f32 0.5, %v639_v22 }
 0x707   :  { %2452 = vrsqrt.f32 %v638_v23  ;;  %v642_v11 = vmul.f32 0.5, %v638_v23  ;;  %v1904_v23 = vld [vmem:[#allocation2 + $0x1c8] ss:$0 sm:$0xff] }
 0x710   :  { %v2451_v24 = vpop.eup %2450 }
 0x711   :  { %v2453_v25 = vpop.eup %2452  ;;  %v645_v26 = vmul.f32 %v2451_v24, %v643_v18 }
 0x712   :  { %v644_v27 = vmul.f32 %v2453_v25, %v642_v11 }
 0x713   :  { %v647_v28 = vmul.f32 %v2451_v24, %v645_v26 }
 0x714   :  { %v646_v29 = vmul.f32 %v2453_v25, %v644_v27 }
 0x715   :  { %v649_v30 = vsub.f32 1.5, %v647_v28 }
 0x716   :  { %v648_v31 = vsub.f32 1.5, %v646_v29 }
 0x717   :  { %v651_v32 = vmul.f32 %v2451_v24, %v649_v30 }
 0x718   :  { %v650_v33 = vmul.f32 %v2453_v25, %v648_v31 }
 0x719   :  { %v653_v35 = vmul.f32 %v651_v32, %v627_v1 }
 0x71a   :  { %v652_v36 = vmul.f32 %v650_v33, %v626_v2 }
 0x71b   :  { %v660_v37 = vmul.f32 %v1896_v34, %v653_v35 }
 0x71c   :  { %v659_v39 = vmul.f32 %v1896_v34, %v652_v36 }
 0x71d   :  { %v2610_v43 = vadd.f32 %v1897_v38, %v660_v37 }
 0x71e   :  { %v2608_v42 = vadd.f32 %v1897_v38, %v659_v39 }
 0x720   :  { %2129 = vmatprep.mubr.msk.f32.mxu1 %vm40_vm0, %v2608_v42 }
 0x721   :  { %2130 = vmatmul.mubr.msk.f32.vlgmr.msra.gmra.mrb[4].mxu1 %vm40_vm0, %v2610_v43 }
 0x722   :  { %2335 = vmatpush3.bf16.msra.mxu1 %v2332_v16  ;;  %2140 = vmatprep.mubr.msk.f32.mxu1 %vm40_vm0, %v2608_v42 }
 0x723   :  { %2337 = vmatprep.subr.bf16.mxu1 %v2336_v44 }
 0x726   :  { %2339 = vmatpush3.bf16.msra.mxu1 %v2336_v44 }
 0x727   :  { %2341 = vmatprep.subr.bf16.mxu1 %v2340_v47 }
 0x729   :  { %2141 = vmatmul.mubr.msk.f32.vlgmr.msra.gmra.mrb[6].mxu1 %vm40_vm0, %v2610_v43 }
 0x72a   :  { %2343 = vmatpush3.bf16.msra.mxu1 %v2340_v47  ;;  %2151 = vmatprep.mubr.msk.f32.mxu1 %vm40_vm0, %v2608_v42 }
 0x72b   :  { %2345 = vmatprep.subr.bf16.mxu1 %v2344_v50 }
 0x72e   :  { %2347 = vmatpush3.bf16.msra.mxu1 %v2344_v50 }
 0x731   :  { %2152 = vmatmul.mubr.msk.f32.vlgmr.msra.gmra.mrb[8].mxu1 %vm40_vm0, %v2610_v43 }
 0x7f4   :  { %v2131_v51 = vpop.f32.mrb[4].mxu1 }
 0x7f5   :  { %v749_v52 = vpop.f32.mrb[5].mxu1  ;;  %v755_v56 = vadd.f32 %v2131_v51, %v1898_v53 }
 0x7f6   :  { %v750_v57 = vadd.f32 %v1898_v53, %v749_v52 }
 0x7fc   :  { %v2142_v55 = vpop.f32.mrb[6].mxu1 }
 0x7fd   :  { %v839_v58 = vadd.f32 %v2142_v55, %v1901_v54  ;;  %v833_v59 = vpop.f32.mrb[7].mxu1  ;;  %v1020_v55 = vld [vmem:[#allocation2 + $0x1e0] sm:$0xff] }
 0x7fe   :  { %v834_v60 = vadd.f32 %v1901_v54, %v833_v59 }
 0x7ff   :  { %v934_v61 = vmul.f32 %v839_v58, %v750_v57  ;;  %v927_v62 = vmul.f32 %v839_v58, %v755_v56  ;;  %v1023_v58 = vld [vmem:[#allocation2 + $0x1f8] sm:$0xff] }
 0x800   :  { %v926_v63 = vmul.f32 %v834_v60, %v750_v57  ;;  %v935_v0 = vmul.f32 %v834_v60, %v755_v56  ;;  %v1021_v56 = vld [vmem:[#allocation2 + $0x1e8] sm:$0xff]  ;;  %v1022_v57 = vld [vmem:[#allocation2 + $0x1f0] sm:$0xff] }
 0x801   :  { %v936_v1 = vsel %vm40_vm0, %v934_v61, 0.0  ;;  %v931_v6 = vsel %vm40_vm0, %v927_v62, 0.0  ;;  %v2352_v59 = vpack.c.bf16 %v1023_v58, %v1022_v57  ;;  %v1171_v57 = vld [vmem:[#allocation2 + $0x290] sm:$0xff] }
 0x802   :  { %937 = vadd.xlane.f32.xlu1 %v936_v1  ;;  %v928_v2 = vsel %vm40_vm0, %v926_v63, 0.0  ;;  %v939_v5 = vsel %vm40_vm0, %v935_v0, 0.0 }
 0x803   :  { %929 = vadd.xlane.f32.xlu0 %v928_v2 }
 0x804   :  { %v2153_v3 = vpop.f32.mrb[8].mxu1 }
 0x805   :  { %v917_v4 = vpop.f32.mrb[9].mxu1  ;;  %v923_v11 = vadd.f32 %v2153_v3, %v1904_v23 }
 0x806   :  { %940 = vadd.xlane.f32.xlu1 %v939_v5  ;;  %v918_v18 = vadd.f32 %v1904_v23, %v917_v4 }
 0x807   :  { %932 = vadd.xlane.f32.xlu0 %v931_v6 }
 0x88f   :  { %v938_v7 = vpop.xlane.xlu1 %937 }
 0x890   :  { %v930_v8 = vpop.xlane.xlu0 %929 }
 0x891   :  { %v942_v9 = vmax.f32 %v930_v8, %v938_v7 }
 0x893   :  { %v944_v10 = vsub.f32 %v930_v8, %v942_v9  ;;  %v950_v12 = vsub.f32 %v938_v7, %v942_v9  ;;  %v941_v13 = vpop.xlane.xlu1 %940 }
 0x894   :  { %v933_v14 = vpop.xlane.xlu0 %932 }
 0x895   :  { %v946_v15 = vmul.f32 1.442695, %v944_v10  ;;  %v952_v16 = vmul.f32 1.442695, %v950_v12  ;;  %v943_v17 = vmax.f32 %v933_v14, %v941_v13 }
 0x897   :  { %2454 = vpow2.f32 %v946_v15  ;;  %v945_v19 = vsub.f32 %v933_v14, %v943_v17  ;;  %v951_v20 = vsub.f32 %v941_v13, %v943_v17  ;;  %v1907_v13 = vld [vmem:[#allocation2 + $0x1d0] ss:$0 sm:$0xff] }
 0x898   :  { %2456 = vpow2.f32 %v952_v16  ;;  %v1908_v16 = vld [vmem:[#allocation2 + $0x1d8] ss:$0 sm:$0xff] }
 0x899   :  { %v948_v21 = vmul.f32 1.442695, %v945_v19  ;;  %v954_v22 = vmul.f32 1.442695, %v951_v20 }
 0x89b   :  { %2458 = vpow2.f32 %v948_v21 }
 0x89c   :  { %2460 = vpow2.f32 %v954_v22 }
 0x8a1   :  { %v2455_v24 = vpop.eup %2454 }
 0x8a2   :  { %v2457_v25 = vpop.eup %2456  ;;  %v956_v26 = vmul.f32 %v2455_v24, %v918_v18 }
 0x8a3   :  { %v962_v27 = vadd.f32 %v2457_v25, %v2455_v24  ;;  %v958_v28 = vmul.f32 %v2457_v25, %v923_v11 }
 0x8a5   :  { %v2459_v29 = vpop.eup %2458  ;;  %2462 = vrcp.f32 %v962_v27  ;;  %v960_v30 = vadd.f32 %v958_v28, %v956_v26  ;;  %v1156_v27 = vld [vmem:[#allocation2 + $0x218] sm:$0xff]  ;;  %v1157_v28 = vld [vmem:[#allocation2 + $0x220] sm:$0xff] }
 0x8a6   :  { %v2461_v31 = vpop.eup %2460  ;;  %v957_v32 = vmul.f32 %v2459_v29, %v923_v11 }
 0x8a7   :  { %v963_v33 = vadd.f32 %v2461_v31, %v2459_v29  ;;  %v959_v34 = vmul.f32 %v2461_v31, %v918_v18  ;;  %v1909_v18 = vld [vmem:[#allocation2 + $0x200] ss:$0 sm:$0xff]  ;;  %v2356_v29 = vpack.c.bf16 %v1157_v28, %v1156_v27 }
 0x8a9   :  { %2464 = vrcp.f32 %v963_v33  ;;  %v961_v35 = vadd.f32 %v959_v34, %v957_v32  ;;  %2357 = vmatprep.subr.bf16.mxu0 %v2356_v29 }
 0x8aa   :  { %2359 = vmatpush3.bf16.msra.mxu0 %v2356_v29 }
 0x8af   :  { %v2463_v36 = vpop.eup %2462 }
 0x8b0   :  { %v965_v37 = vmul.f32 %v2463_v36, %v960_v30 }
 0x8b2   :  { %v968_v38 = vadd.f32 %v965_v37, %v2608_v42 }
 0x8b3   :  { %v2465_v39 = vpop.eup %2464 }
 0x8b4   :  { %v970_v40 = vsel %vm40_vm0, %v968_v38, 0.0  ;;  %v967_v41 = vmul.f32 %v2465_v39, %v961_v35  ;;  %v1159_v39 = vld [vmem:[#allocation2 + $0x230] sm:$0xff] }
 0x8b5   :  { %971 = vadd.xlane.f32.xlu0 %v970_v40 }
 0x8b6   :  { %v969_v44 = vadd.f32 %v967_v41, %v2610_v43  ;;  %v2348_v43 = vpack.c.bf16 %v1021_v56, %v1020_v55  ;;  %v1160_v41 = vld [vmem:[#allocation2 + $0x238] sm:$0xff]  ;;  %v1169_v55 = vld [vmem:[#allocation2 + $0x280] sm:$0xff] }
 0x8b8   :  { %v973_v45 = vsel %vm40_vm0, %v969_v44, 0.0  ;;  %2349 = vmatprep.subr.bf16.mxu1 %v2348_v43 }
 0x8b9   :  { %974 = vadd.xlane.f32.xlu1 %v973_v45  ;;  %2351 = vmatpush3.bf16.msra.mxu1 %v2348_v43  ;;  %v1170_v43 = vld [vmem:[#allocation2 + $0x288] sm:$0xff] }
 0x8ba   :  { %2353 = vmatprep.subr.bf16.mxu1 %v2352_v59  ;;  %v2384_v58 = vpack.c.bf16 %v1171_v57, %v1170_v43 }
 0x8bd   :  { %2355 = vmatpush3.bf16.msra.mxu1 %v2352_v59 }
 0x942   :  { %v972_v46 = vpop.xlane.xlu0 %971 }
 0x943   :  { %v976_v47 = vmul.f32 0.03125, %v972_v46  ;;  %v1162_v46 = vld [vmem:[#allocation2 + $0x248] sm:$0xff] }
 0x945   :  { %v978_v48 = vsub.f32 %v968_v38, %v976_v47  ;;  %v1158_v38 = vld [vmem:[#allocation2 + $0x228] sm:$0xff]  ;;  %v1163_v47 = vld [vmem:[#allocation2 + $0x250] sm:$0xff] }
 0x946   :  { %v975_v49 = vpop.xlane.xlu1 %974  ;;  %v2360_v40 = vpack.c.bf16 %v1159_v39, %v1158_v38  ;;  %v1306_v38 = vld [vmem:[#allocation2 + $0x2d0] sm:$0xff]  ;;  %v1307_v39 = vld [vmem:[#allocation2 + $0x2d8] sm:$0xff] }
 0x947   :  { %v977_v50 = vmul.f32 0.03125, %v975_v49  ;;  %v980_v51 = vmul.f32 %v978_v48, %v978_v48  ;;  %v1164_v49 = vld [vmem:[#allocation2 + $0x258] sm:$0xff] }
 0x948   :  { %2361 = vmatprep.subr.bf16.mxu0 %v2360_v40 }
 0x949   :  { %v979_v52 = vsub.f32 %v969_v44, %v977_v50  ;;  %v982_v53 = vsel %vm40_vm0, %v980_v51, 0.0  ;;  %2363 = vmatpush3.bf16.msra.mxu0 %v2360_v40  ;;  %v1161_v44 = vld [vmem:[#allocation2 + $0x240] sm:$0xff]  ;;  %v2389_v40 = vpack.c.bf16 %v1307_v39, %v1306_v38 }
 0x94a   :  { %983 = vadd.xlane.f32.xlu0 %v982_v53  ;;  %v2364_v45 = vpack.c.bf16 %v1161_v44, %v1160_v41  ;;  %v1165_v50 = vld [vmem:[#allocation2 + $0x260] sm:$0xff]  ;;  %v1167_v53 = vld [vmem:[#allocation2 + $0x270] sm:$0xff]  ;;  %v2533_v41 = vmov 0.0|0.0  }
 0x94b   :  { %v981_v42 = vmul.f32 %v979_v52, %v979_v52  ;;  %v2372_v51 = vpack.c.bf16 %v1165_v50, %v1164_v49  ;;  %2388 = vmatprep.subr.bf16.mxu1 %v2533_v41  ;;  %v1308_v44 = vld [vmem:[#allocation2 + $0x2e0] sm:$0xff] }
 0x94c   :  { %2365 = vmatprep.subr.bf16.mxu0 %v2364_v45 }
 0x94d   :  { %v985_v54 = vsel %vm40_vm0, %v981_v42, 0.0  ;;  %2367 = vmatpush3.bf16.msra.mxu0 %v2364_v45  ;;  %v1309_v45 = vld [vmem:[#allocation2 + $0x2e8] sm:$0xff] }
 0x94e   :  { %986 = vadd.xlane.f32.xlu1 %v985_v54  ;;  %v1168_v54 = vld [vmem:[#allocation2 + $0x278] sm:$0xff] }
 0x94f   :  { %v2380_v56 = vpack.c.bf16 %v1169_v55, %v1168_v54 }
 0x9d7   :  { %v984_v60 = vpop.xlane.xlu0 %983 }
 0x9d8   :  { %v988_v61 = vmul.f32 0.03125, %v984_v60 }
 0x9da   :  { %v990_v62 = vadd.f32 1e-05, %v988_v61 }
 0x9db   :  { %v987_v63 = vpop.xlane.xlu1 %986 }
 0x9dc   :  { %2466 = vrsqrt.f32 %v990_v62  ;;  %v989_v0 = vmul.f32 0.03125, %v987_v63  ;;  %v994_v2 = vmul.f32 0.5, %v990_v62 }
 0x9de   :  { %v991_v1 = vadd.f32 1e-05, %v989_v0 }
 0x9e0   :  { %2468 = vrsqrt.f32 %v991_v1  ;;  %v995_v6 = vmul.f32 0.5, %v991_v1 }
 0x9e6   :  { %v2467_v3 = vpop.eup %2466 }
 0x9e7   :  { %v996_v4 = vmul.f32 %v2467_v3, %v994_v2 }
 0x9e9   :  { %v998_v5 = vmul.f32 %v2467_v3, %v996_v4 }
 0x9ea   :  { %v2469_v7 = vpop.eup %2468 }
 0x9eb   :  { %v1000_v8 = vsub.f32 1.5, %v998_v5  ;;  %v997_v9 = vmul.f32 %v2469_v7, %v995_v6 }
 0x9ed   :  { %v1002_v10 = vmul.f32 %v2467_v3, %v1000_v8  ;;  %v999_v12 = vmul.f32 %v2469_v7, %v997_v9 }
 0x9ef   :  { %v1001_v14 = vsub.f32 1.5, %v999_v12  ;;  %v1004_v15 = vmul.f32 %v1002_v10, %v978_v48  ;;  %v2368_v48 = vpack.c.bf16 %v1163_v47, %v1162_v46  ;;  %v2392_v46 = vpack.c.bf16 %v1309_v45, %v1308_v44  ;;  %v1920_v45 = vld [vmem:[#allocation2 + $0x2f8] ss:$0 sm:$0xff] }
 0x9f0   :  { %v2535_v47 = vmov 0.0  }
 0x9f1   :  { %v1003_v17 = vmul.f32 %v2469_v7, %v1001_v14  ;;  %v1011_v19 = vmul.f32 %v1907_v13, %v1004_v15  ;;  %2369 = vmatprep.subr.bf16.mxu0 %v2368_v48  ;;  %v1912_v14 = vld [vmem:[#allocation2 + $0x208] ss:$0 sm:$0xff] }
 0x9f2   :  { %2371 = vmatpush3.bf16.msra.mxu0 %v2368_v48 }
 0x9f3   :  { %v1005_v20 = vmul.f32 %v1003_v17, %v979_v52  ;;  %v1018_v21 = vadd.f32 %v1908_v16, %v1011_v19  ;;  %2373 = vmatprep.subr.bf16.mxu0 %v2372_v51  ;;  %v1166_v52 = vld [vmem:[#allocation2 + $0x268] sm:$0xff]  ;;  %v1913_v19 = vld [vmem:[#allocation2 + $0x210] ss:$0 sm:$0xff] }
 0x9f4   :  { %v2376_v42 = vpack.c.bf16 %v1167_v53, %v1166_v52 }
 0x9f5   :  { %v1012_v22 = vmul.f32 %v1907_v13, %v1005_v20  ;;  %2162 = vmatprep.mubr.msk.f32.mxu1 %vm40_vm0, %v1018_v21 }
 0x9f6   :  { %2375 = vmatpush3.bf16.msra.mxu0 %v2372_v51 }
 0x9f7   :  { %v1019_v23 = vadd.f32 %v1908_v16, %v1012_v22  ;;  %2377 = vmatprep.subr.bf16.mxu0 %v2376_v42 }
 0x9f9   :  { %2163 = vmatmul.mubr.msk.f32.vlgmr.msra.gmra.mrb[10].mxu1 %vm40_vm0, %v1019_v23  ;;  %v1914_v23 = vld [vmem:[#allocation2 + $0x298] ss:$0 sm:$0xff] }
 0x9fa   :  { %2379 = vmatpush3.bf16.msra.mxu0 %v2376_v42  ;;  %2390 = vmatpush3.bf16.msra.mxu1 %v2389_v40 }
 0x9fb   :  { %2381 = vmatprep.subr.bf16.mxu0 %v2380_v56  ;;  %2391 = vmatprep.subr.bf16.mxu1 %v2533_v41 }
 0x9fc   :  { %2208 = vmatprep.mubr.msk.f32.mxu1 %vm2534_vm1, %v2535_v47 }
 0x9fe   :  { %2383 = vmatpush3.bf16.msra.mxu0 %v2380_v56  ;;  %2393 = vmatpush3.bf16.msra.mxu1 %v2392_v46 }
 0x9ff   :  { %2385 = vmatprep.subr.bf16.mxu0 %v2384_v58  ;;  %2394 = vmatprep.subr.bf16.mxu1 %v2533_v41 }
 0xa02   :  { %2387 = vmatpush3.bf16.msra.mxu0 %v2384_v58 }
 0xa03   :  { %2244 = vmatprep.subr.mxu0 %v2535_v47 }
 0xacc   :  { %v2164_v24 = vpop.f32.mrb[10].mxu1 }
 0xacd   :  { %v1107_v11 = vadd.f32 %v2164_v24, %v1909_v18  ;;  %v1101_v25 = vpop.f32.mrb[11].mxu1 }
 0xace   :  { %v1102_v26 = vadd.f32 %v1909_v18, %v1101_v25 }
 0xacf   :  { %1112 = vadd.xlane.f32.xlu1 %v1107_v11 }
 0xad0   :  { %1110 = vadd.xlane.f32.xlu0 %v1102_v26 }
 0xb5c   :  { %v1113_v30 = vpop.xlane.xlu1 %1112 }
 0xb5d   :  { %v1115_v31 = vmul.f32 0.0078125, %v1113_v30  ;;  %v1111_v32 = vpop.xlane.xlu0 %1110 }
 0xb5e   :  { %v1114_v33 = vmul.f32 0.0078125, %v1111_v32 }
 0xb5f   :  { %v1117_v34 = vsub.f32 %v1107_v11, %v1115_v31 }
 0xb60   :  { %v1116_v35 = vsub.f32 %v1102_v26, %v1114_v33 }
 0xb61   :  { %v1119_v36 = vmul.f32 %v1117_v34, %v1117_v34 }
 0xb62   :  { %v1118_v37 = vmul.f32 %v1116_v35, %v1116_v35 }
 0xb63   :  { %1122 = vadd.xlane.f32.xlu1 %v1119_v36 }
 0xb64   :  { %1120 = vadd.xlane.f32.xlu0 %v1118_v37 }
 0xbf0   :  { %v1123_v59 = vpop.xlane.xlu1 %1122 }
 0xbf1   :  { %v1125_v60 = vmul.f32 0.0078125, %v1123_v59  ;;  %v1121_v61 = vpop.xlane.xlu0 %1120 }
 0xbf2   :  { %v1124_v62 = vmul.f32 0.0078125, %v1121_v61 }
 0xbf3   :  { %v1127_v63 = vadd.f32 1e-05, %v1125_v60 }
 0xbf4   :  { %v1126_v0 = vadd.f32 1e-05, %v1124_v62 }
 0xbf5   :  { %2470 = vrsqrt.f32 %v1127_v63  ;;  %v1131_v1 = vmul.f32 0.5, %v1127_v63  ;;  %v1915_v63 = vld [vmem:[#allocation2 + $0x2a0] ss:$0 sm:$0xff] }
 0xbf6   :  { %2472 = vrsqrt.f32 %v1126_v0  ;;  %v1130_v3 = vmul.f32 0.5, %v1126_v0 }
 0xbff   :  { %v2471_v2 = vpop.eup %2470 }
 0xc00   :  { %v2473_v4 = vpop.eup %2472  ;;  %v1133_v5 = vmul.f32 %v2471_v2, %v1131_v1 }
 0xc01   :  { %v1132_v6 = vmul.f32 %v2473_v4, %v1130_v3  ;;  %v1303_v3 = vld [vmem:[#allocation2 + $0x2b8] sm:$0xff] }
 0xc02   :  { %v1135_v7 = vmul.f32 %v2471_v2, %v1133_v5 }
 0xc03   :  { %v1134_v8 = vmul.f32 %v2473_v4, %v1132_v6 }
 0xc04   :  { %v1137_v9 = vsub.f32 1.5, %v1135_v7 }
 0xc05   :  { %v1136_v10 = vsub.f32 1.5, %v1134_v8 }
 0xc06   :  { %v1139_v12 = vmul.f32 %v2471_v2, %v1137_v9  ;;  %v1302_v2 = vld [vmem:[#allocation2 + $0x2b0] sm:$0xff]  ;;  %v1304_v9 = vld [vmem:[#allocation2 + $0x2c0] sm:$0xff] }
 0xc07   :  { %v1138_v13 = vmul.f32 %v2473_v4, %v1136_v10  ;;  %v1916_v4 = vld [vmem:[#allocation2 + $0x2a8] ss:$0 sm:$0xff]  ;;  %v2395_v6 = vpack.c.bf16 %v1303_v3, %v1302_v2  ;;  %v1690_v2 = vld [vmem:[%s2688_s1] sm:$0xff] }
 0xc08   :  { %v1141_v15 = vmul.f32 %v1139_v12, %v1117_v34  ;;  %v1305_v10 = vld [vmem:[#allocation2 + $0x2c8] sm:$0xff] }
 0xc09   :  { %v1140_v16 = vmul.f32 %v1138_v13, %v1116_v35  ;;  %v2398_v12 = vpack.c.bf16 %v1305_v10, %v1304_v9 }
 0xc0a   :  { %v1148_v17 = vmul.f32 %v1912_v14, %v1141_v15 }
 0xc0b   :  { %v1147_v20 = vmul.f32 %v1912_v14, %v1140_v16 }
 0xc0c   :  { %v1155_v22 = vadd.f32 %v1913_v19, %v1148_v17 }
 0xc0d   :  { %v1154_v21 = vadd.f32 %v1913_v19, %v1147_v20  ;;  %v1919_v19 = vld [vmem:[#allocation2 + $0x2f0] ss:$0 sm:$0xff] }
 0xc0f   :  { %2197 = vmatprep.mubr.f32.mxu0 %v1154_v21 }
 0xc10   :  { %2198 = vmatmul.mubr.f32.vlgmr.msra.gmra.mrb[6].mxu0 %v1155_v22 }
 0xc11   :  { %2246 = vmatprep.mubr.msk.f32.mxu0 %vm2534_vm1, %v2535_v47 }
 0xce3   :  { %v2199_v18 = vpop.f32.mrb[6].mxu0 }
 0xce4   :  { %v1249_v24 = vadd.f32 %v2199_v18, %v1914_v23  ;;  %v1243_v11 = vpop.f32.mrb[7].mxu0 }
 0xce5   :  { %v1244_v25 = vadd.f32 %v1914_v23, %v1243_v11 }
 0xce6   :  { %v1255_v26 = vsel %vm40_vm0, %v1249_v24, 0.0 }
 0xce7   :  { %1256 = vadd.xlane.f32.xlu0 %v1255_v26  ;;  %v1252_v27 = vsel %vm40_vm0, %v1244_v25, 0.0 }
 0xce8   :  { %1253 = vadd.xlane.f32.xlu1 %v1252_v27  ;;  %v1492_v27 = vld [vmem:[#allocation2 + $0x308] sm:$0xff] }
 0xd74   :  { %v1257_v28 = vpop.xlane.xlu0 %1256 }
 0xd75   :  { %v1259_v29 = vmul.f32 0.03125, %v1257_v28  ;;  %v1254_v30 = vpop.xlane.xlu1 %1253  ;;  %v1493_v28 = vld [vmem:[#allocation2 + $0x310] sm:$0xff] }
 0xd76   :  { %v1258_v31 = vmul.f32 0.03125, %v1254_v30  ;;  %v1494_v30 = vld [vmem:[#allocation2 + $0x318] sm:$0xff] }
 0xd77   :  { %v1261_v32 = vsub.f32 %v1249_v24, %v1259_v29  ;;  %v2401_v29 = vpack.c.bf16 %v1493_v28, %v1492_v27 }
 0xd78   :  { %v1260_v33 = vsub.f32 %v1244_v25, %v1258_v31  ;;  %v1495_v31 = vld [vmem:[#allocation2 + $0x320] sm:$0xff] }
 0xd79   :  { %v1263_v34 = vmul.f32 %v1261_v32, %v1261_v32 }
 0xd7a   :  { %v1262_v35 = vmul.f32 %v1260_v33, %v1260_v33 }
 0xd7b   :  { %v1267_v36 = vsel %vm40_vm0, %v1263_v34, 0.0 }
 0xd7c   :  { %1268 = vadd.xlane.f32.xlu0 %v1267_v36  ;;  %v1264_v37 = vsel %vm40_vm0, %v1262_v35, 0.0 }
 0xd7d   :  { %1265 = vadd.xlane.f32.xlu1 %v1264_v37 }
 0xe09   :  { %v1269_v48 = vpop.xlane.xlu0 %1268 }
 0xe0a   :  { %v1271_v49 = vmul.f32 0.03125, %v1269_v48  ;;  %v1266_v50 = vpop.xlane.xlu1 %1265  ;;  %v1921_v48 = vld [vmem:[#allocation2 + $0x300] ss:$0 sm:$0xff] }
 0xe0b   :  { %v1270_v51 = vmul.f32 0.03125, %v1266_v50 }
 0xe0c   :  { %v1273_v52 = vadd.f32 1e-05, %v1271_v49 }
 0xe0d   :  { %v1272_v53 = vadd.f32 1e-05, %v1270_v51  ;;  %v1922_v51 = vld [vmem:[#allocation2 + $0x328] ss:$0 sm:$0xff] }
 0xe0e   :  { %2474 = vrsqrt.f32 %v1273_v52  ;;  %v1277_v42 = vmul.f32 0.5, %v1273_v52 }
 0xe0f   :  { %2476 = vrsqrt.f32 %v1272_v53  ;;  %v1276_v55 = vmul.f32 0.5, %v1272_v53 }
 0xe18   :  { %v2475_v54 = vpop.eup %2474 }
 0xe19   :  { %v2477_v56 = vpop.eup %2476  ;;  %v1279_v43 = vmul.f32 %v2475_v54, %v1277_v42 }
 0xe1a   :  { %v1278_v57 = vmul.f32 %v2477_v56, %v1276_v55 }
 0xe1b   :  { %v1281_v58 = vmul.f32 %v2475_v54, %v1279_v43 }
 0xe1c   :  { %v1280_v59 = vmul.f32 %v2477_v56, %v1278_v57 }
 0xe1d   :  { %v1283_v60 = vsub.f32 1.5, %v1281_v58 }
 0xe1e   :  { %v1282_v61 = vsub.f32 1.5, %v1280_v59  ;;  %v1604_v59 = vld [vmem:[#allocation2 + $0x340] sm:$0xff] }
 0xe1f   :  { %v1285_v62 = vmul.f32 %v2475_v54, %v1283_v60  ;;  %v1605_v60 = vld [vmem:[#allocation2 + $0x348] sm:$0xff] }
 0xe20   :  { %v1284_v1 = vmul.f32 %v2477_v56, %v1282_v61  ;;  %v2407_v61 = vpack.c.bf16 %v1605_v60, %v1604_v59 }
 0xe21   :  { %v1287_v0 = vmul.f32 %v1285_v62, %v1261_v32  ;;  %v2404_v32 = vpack.c.bf16 %v1495_v31, %v1494_v30  ;;  %v1606_v62 = vld [vmem:[#allocation2 + $0x350] sm:$0xff] }
 0xe22   :  { %v1286_v7 = vmul.f32 %v1284_v1, %v1260_v33  ;;  %v1691_v1 = vld [vmem:[#allocation2 + $0x388] sm:$0xff]  ;;  %v1930_v31 = vld [vmem:[#allocation2 + $0x390] ss:$0 sm:$0xff] }
 0xe23   :  { %v1294_v5 = vmul.f32 %v1915_v63, %v1287_v0  ;;  %2245 = vmatpush3.msra.mxu0 %v1691_v1 }
 0xe24   :  { %v1293_v13 = vmul.f32 %v1915_v63, %v1286_v7  ;;  %v1607_v63 = vld [vmem:[#allocation2 + $0x358] sm:$0xff]  ;;  %2247 = vmatmul.mubr.msk.f32.vlgmr.msra.gmra.mrb[8].mxu0 %vm1692_vm2, %v1690_v2 }
 0xe25   :  { %v1301_v8 = vadd.f32 %v1916_v4, %v1294_v5  ;;  %v2410_v0 = vpack.c.bf16 %v1607_v63, %v1606_v62 }
 0xe26   :  { %v1300_v14 = vadd.f32 %v1916_v4, %v1293_v13  ;;  %v1924_v13 = vld [vmem:[#allocation2 + $0x330] ss:$0 sm:$0xff] }
 0xe27   :  { %2209 = vmatmul.mubr.msk.f32.vlgmr.msra.gmra.mrb[12].mxu1 %vm40_vm0, %v1301_v8 }
 0xe28   :  { %2396 = vmatpush3.bf16.msra.mxu1 %v2395_v6  ;;  %2219 = vmatprep.mubr.msk.f32.mxu1 %vm2534_vm1, %v2535_v47 }
 0xe29   :  { %2397 = vmatprep.subr.bf16.mxu1 %v2533_v41 }
 0xe2c   :  { %2399 = vmatpush3.bf16.msra.mxu1 %v2398_v12 }
 0xe2d   :  { %2400 = vmatprep.subr.bf16.mxu1 %v2533_v41 }
 0xe2f   :  { %2220 = vmatmul.mubr.msk.f32.vlgmr.msra.gmra.mrb[14].mxu1 %vm40_vm0, %v1300_v14 }
 0xe30   :  { %2230 = vmatprep.mubr.msk.f32.mxu1 %vm2534_vm1, %v2535_v47  ;;  %2402 = vmatpush3.bf16.msra.mxu1 %v2401_v29 }
 0xe31   :  { %2403 = vmatprep.subr.bf16.mxu1 %v2533_v41 }
 0xe34   :  { %2405 = vmatpush3.bf16.msra.mxu1 %v2404_v32 }
 0xe35   :  { %2406 = vmatprep.subr.bf16.mxu1 %v2533_v41 }
 0xefa   :  { %v1379_v15 = vpop.f32.mrb[12].mxu1 }
 0xefb   :  { %v2210_v16 = vpop.f32.mrb[13].mxu1 }
 0xefc   :  { %v1687_v16 = vld [vmem:[#allocation2 + $0x370] sm:$0xff] }
 0xf02   :  { %v1452_v17 = vpop.f32.mrb[14].mxu1 }
 0xf03   :  { %v1453_v20 = vadd.f32 %v1452_v17, %v1379_v15  ;;  %v2221_v21 = vpop.f32.mrb[15].mxu1  ;;  %v1686_v15 = vld [vmem:[#allocation2 + $0x368] sm:$0xff]  ;;  %v1925_v17 = vld [vmem:[#allocation2 + $0x338] ss:$0 sm:$0xff] }
 0xf05   :  { %v1461_v22 = vadd.f32 %v1919_v19, %v1453_v20  ;;  %v2413_v20 = vpack.c.bf16 %v1687_v16, %v1686_v15 }
 0xf07   :  { %v1462_v23 = vsel %vm40_vm0, %v1461_v22, 0.0 }
 0xf08   :  { %1463 = vadd.xlane.f32.xlu0 %v1462_v23  ;;  %v1689_v23 = vld [vmem:[#allocation2 + $0x380] sm:$0xff] }
 0xf95   :  { %v1464_v18 = vpop.xlane.xlu0 %1463 }
 0xf96   :  { %v1465_v24 = vmul.f32 0.03125, %v1464_v18 }
 0xf98   :  { %v1466_v11 = vsub.f32 %v1461_v22, %v1465_v24  ;;  %v1688_v22 = vld [vmem:[#allocation2 + $0x378] sm:$0xff]  ;;  %v2536_v24 = vmov 0  }
 0xf99   :  { %v2416_v18 = vpack.c.bf16 %v1689_v23, %v1688_v22  ;;  %2428 = vset.pattern.permute.xlu1 %v2536_v24  ;;  %2429 = vset.pattern.permute.xlu0 %v2536_v24 }
 0xf9a   :  { %v1467_v25 = vmul.f32 %v1466_v11, %v1466_v11 }
 0xf9c   :  { %v1468_v26 = vsel %vm40_vm0, %v1467_v25, 0.0 }
 0xf9d   :  { %1469 = vadd.xlane.f32.xlu1 %v1468_v26  ;;  %v1926_v26 = vld [vmem:[#allocation2 + $0x360] ss:$0 sm:$0xff] }
0x102a   :  { %v1470_v33 = vpop.xlane.xlu1 %1469 }
0x102b   :  { %v1471_v34 = vmul.f32 0.03125, %v1470_v33 }
0x102d   :  { %v1472_v35 = vadd.f32 1e-05, %v1471_v34 }
0x102f   :  { %2478 = vrsqrt.f32 %v1472_v35  ;;  %v1474_v36 = vmul.f32 0.5, %v1472_v35 }
0x1039   :  { %v2479_v37 = vpop.eup %2478 }
0x103a   :  { %v1475_v38 = vmul.f32 %v2479_v37, %v1474_v36 }
0x103c   :  { %v1476_v39 = vmul.f32 %v2479_v37, %v1475_v38 }
0x103e   :  { %v1477_v40 = vsub.f32 1.5, %v1476_v39 }
0x1040   :  { %v1478_v44 = vmul.f32 %v2479_v37, %v1477_v40 }
0x1042   :  { %v1479_v46 = vmul.f32 %v1478_v44, %v1466_v11  ;;  %v1762_v11 = vpop.f32.mrb[8].mxu0 }
0x1043   :  { %v2248_v25 = vpop.f32.mrb[9].mxu0 }
0x1044   :  { %v1485_v49 = vmul.f32 %v1920_v45, %v1479_v46 }
0x1046   :  { %v1491_v50 = vadd.f32 %v1921_v48, %v1485_v49 }
0x1048   :  { %2231 = vmatmul.mubr.msk.f32.vlgmr.msra.gmra.mrb[16].mxu1 %vm40_vm0, %v1491_v50 }
0x1049   :  { %2241 = vmatprep.mubr.msk.f32.mxu1 %vm2534_vm1, %v2535_v47  ;;  %2408 = vmatpush3.bf16.msra.mxu1 %v2407_v61 }
0x104a   :  { %2409 = vmatprep.subr.bf16.mxu1 %v2533_v41 }
0x104d   :  { %2411 = vmatpush3.bf16.msra.mxu1 %v2410_v0 }
0x104e   :  { %2412 = vmatprep.subr.bf16.mxu1 %v2533_v41 }
0x111b   :  { %v1570_v52 = vpop.f32.mrb[16].mxu1 }
0x111c   :  { %v1571_v53 = vadd.f32 %v1922_v51, %v1570_v52  ;;  %v2232_v42 = vpop.f32.mrb[17].mxu1 }
0x111e   :  { %v1574_v54 = vsel %vm40_vm0, %v1571_v53, 0.0 }
0x111f   :  { %1575 = vadd.xlane.f32.xlu0 %v1574_v54 }
0x11ac   :  { %v1576_v55 = vpop.xlane.xlu0 %1575 }
0x11ad   :  { %v1577_v56 = vmul.f32 0.03125, %v1576_v55 }
0x11af   :  { %v1578_v43 = vsub.f32 %v1571_v53, %v1577_v56 }
0x11b1   :  { %v1579_v57 = vmul.f32 %v1578_v43, %v1578_v43 }
0x11b3   :  { %v1580_v58 = vsel %vm40_vm0, %v1579_v57, 0.0 }
0x11b4   :  { %1581 = vadd.xlane.f32.xlu1 %v1580_v58 }
0x1241   :  { %v1582_v3 = vpop.xlane.xlu1 %1581 }
0x1242   :  { %v1583_v4 = vmul.f32 0.03125, %v1582_v3 }
0x1244   :  { %v1584_v5 = vadd.f32 1e-05, %v1583_v4 }
0x1246   :  { %2480 = vrsqrt.f32 %v1584_v5  ;;  %v1586_v6 = vmul.f32 0.5, %v1584_v5 }
0x1250   :  { %v2481_v7 = vpop.eup %2480 }
0x1251   :  { %v1587_v8 = vmul.f32 %v2481_v7, %v1586_v6 }
0x1253   :  { %v1588_v9 = vmul.f32 %v2481_v7, %v1587_v8 }
0x1255   :  { %v1589_v10 = vsub.f32 1.5, %v1588_v9 }
0x1257   :  { %v1590_v12 = vmul.f32 %v2481_v7, %v1589_v10 }
0x1259   :  { %v1591_v14 = vmul.f32 %v1590_v12, %v1578_v43 }
0x125b   :  { %v1597_v19 = vmul.f32 %v1924_v13, %v1591_v14 }
0x125d   :  { %v1603_v21 = vadd.f32 %v1925_v17, %v1597_v19 }
0x125f   :  { %2242 = vmatmul.mubr.msk.f32.vlgmr.msra.gmra.mrb[18].mxu1 %vm40_vm0, %v1603_v21 }
0x1260   :  { %2414 = vmatpush3.bf16.msra.mxu1 %v2413_v20  ;;  %2257 = vmatprep.mubr.msk.f32.mxu1 %vm2534_vm1, %v2535_v47 }
0x1261   :  { %2415 = vmatprep.subr.bf16.mxu1 %v2533_v41 }
0x1264   :  { %2417 = vmatpush3.bf16.msra.mxu1 %v2416_v18 }
0x1267   :  { %2258 = vmatmul.mubr.msk.f32.vlgmr.msra.gmra.mrb[20].mxu1 %vm40_vm0, %v1603_v21 }
0x1332   :  { %v1682_v27 = vpop.f32.mrb[18].mxu1 }
0x1333   :  { %v1683_v28 = vadd.f32 %v1926_v26, %v1682_v27  ;;  %v2243_v29 = vpop.f32.mrb[19].mxu1 }
0x1335   :  { %1858 = vperm.xlu1 %2428, %v1683_v28  }
0x133a   :  { %v1832_v30 = vpop.f32.mrb[20].mxu1 }
0x133b   :  { %v1833_v32 = vadd.f32 %v1832_v30, %v1762_v11  ;;  %v2259_v33 = vpop.f32.mrb[21].mxu1 }
0x133d   :  { %v1841_v47 = vadd.f32 %v1930_v31, %v1833_v32 }
0x133f   :  { %vm1842_vm3 = vcmp.gt.f32.partialorder %v1841_v47, 0.0  ;;  %v1843_v41 = vmul.f32 0.01, %v1841_v47 }
0x1341   :  { %v1844_v34 = vsel %vm1842_vm3, %v1841_v47, %v1843_v41 }
0x1342   :  { %1845 = vadd.xlane.f32.xlu0 %v1844_v34 }
0x13b4   :  { %v1859_v45 = vpop.permute.xlu1 %1858 }
0x13b5   :  { %v1861_v48 = vadd.f32 %v1859_v45, %v1844_v34 }
0x13cf   :  { %v1846_v35 = vpop.xlane.xlu0 %1845 }
0x13d0   :  { %v1847_v36 = vrot.slane %v1846_v35, 4 }
0x13d2   :  { %v1848_v37 = vadd.f32 %v1847_v36, %v1846_v35 }
0x13d4   :  { %v1849_v38 = vrot.slane %v1848_v37, 2 }
0x13d6   :  { %v1850_v39 = vadd.f32 %v1849_v38, %v1848_v37 }
0x13d8   :  { %v1851_v40 = vrot.slane %v1850_v39, 1 }
0x13da   :  { %v1852_v44 = vadd.f32 %v1851_v40, %v1850_v39 }
0x13dc   :  { %2418 = vpush %v1852_v44 }
0x140d   :  { %s2419_s1 = spop %2418 }
0x140e   :  { %v1854_v46 = vstv %s2419_s1 }
0x140f   :  { %v1855_v49 = vmul.f32 0.00390625, %v1854_v46 }
0x1411   :  { %v1862_v50 = vsub.f32 %v1861_v48, %v1855_v49 }
0x1413   :  { %1863 = vst [vmem:[#allocation5] sm:$0xff] %v1862_v50 }
0x1414   :  { %2515 = shalt.err (!%p2512_p12)
}
0x1415   :  { %s2516_s8 = scalar_lea.hbm %s2690_s3, 128 }
0x1416   :  { %p2517_p13 = scmp.ne.s32.totalorder %s2690_s3, %s2516_s8  ;;  %p2520_p0 = scmp.lt.u32.totalorder %s2516_s8, %s2690_s3 }
0x1418   :  { %p2522_p1 = pnand %p2520_p0, %p2517_p13 }
0x141a   :  { %2525 = shalt.err (!%p2522_p1)
}
0x141b   :  { %1873 = dma.vmem_to_hbm [thread:$0]  %s1871_s4, 128, %s2690_s3, [#allocation4]  }
0x141c   :  { %2528 = dma.done.wait [#allocation4], 128  }
0x141d   :  { %2529 = vsyncadd [#allocation4], 4294967168 }
0x141e   :  { %1877 = vsyncpa [#allocation3], 1 }
0x141f   :  { %1878 = vsyncpa [#allocation4], 1 }

</bundles_post_ra>
